<compile_context>
chip_gen: v7x
topology: tpu7x:2x2x1
jax: 0.10.0
libtpu: 0.0.40
codegen_flags: <defaults>
</compile_context>

<pallas_src>
import functools

import jax
import jax.numpy as jnp
from jax import lax
from jax.experimental import pallas as pl
from jax.experimental.pallas import tpu as pltpu


def _dwsep_kernel(x_ref, m_ref, b_ref, mask_ref, o_ref, *, W):
    # x_ref   : (1, Cin, Lf)   flattened, zero-padded input (lanes = flattened H*W)
    # m_ref   : (Cout, 9*Cin)  fused tap weights; column t*Cin+ci = (Wpw @ D_t)[:, ci]
    # b_ref   : (Cout, 1)      fused bias (Wpw @ b_dw + b_pw)
    # mask_ref: (2, HW)        row 0 kills w==0 lanes, row 1 kills w==W-1 lanes
    # o_ref   : (1, Cout, HW)  output, NCHW with H*W flattened on the lane axis
    _, Cout, HW = o_ref.shape
    Cin = x_ref.shape[1]

    x = x_ref[0]                               # (Cin, Lf)
    m = m_ref[...]                             # (Cout, 9*Cin) — single (8,128) tile
    mask_l = mask_ref[0:1, :]                  # (1, HW)
    mask_r = mask_ref[1:2, :]                  # (1, HW)

    acc = jnp.zeros((Cout, HW), jnp.float32) + b_ref[...]

    for t in range(9):
        dy, dx = divmod(t, 3)
        s = dy * W + dx                                   # constant lane shift for this tap
        src = x[:, s:s + HW].astype(jnp.float32)          # (Cin, HW)
        if dx == 0:                                       # implicit left W-padding
            src = src * mask_l
        elif dx == 2:                                     # implicit right W-padding
            src = src * mask_r
        for c in range(Cin):
            col = m[:, t * Cin + c:t * Cin + c + 1]       # (Cout, 1) -> broadcast over lanes
            acc = acc + col * src[c:c + 1, :]             # (1, HW)  -> broadcast over sublanes
    o_ref[0] = acc.astype(o_ref.dtype)                    # one lane-dense, unmasked store


@functools.partial(jax.jit, static_argnames=("padding",))
def depthwise_separable_conv(x, w_dw, b_dw, w_pw, b_pw, *, padding=1):
    """x: (N, Cin, H, W) NCHW.  w_dw: (Cin, Cin//G, 3, 3), w_pw: (Cout, Cin, 1, 1)."""
    N, Cin, H, W = x.shape
    Cout = w_pw.shape[0]
    Cg = w_dw.shape[1]                                    # in/out channels per group
    assert w_dw.shape[2:] == (3, 3) and padding == 1, "specialised to k=3, padding=1"
    assert Cin % Cg == 0 and w_pw.shape[1] == Cin
    HW = H * W
    f32 = jnp.float32

    # ---- fold grouped 3x3 + 1x1 into 9 dense (Cout, Cin) tap matrices (vectorized) ----
    l_idx = jnp.arange(Cg)[:, None, None]                 # local in-channel within group
    cm = jnp.arange(Cin)[None, :, None]                   # depthwise out channel
    cin = jnp.arange(Cin)[None, None, :]                  # depthwise in channel
    sel = (cin == (cm // Cg) * Cg + l_idx).astype(f32)    # (Cg, Cin, Cin) one-hot group map
    dense = jnp.einsum("lmc,mlhw->mchw", sel, w_dw.astype(f32))   # (Cin_out, Cin_in, 3, 3)
    D9 = jnp.transpose(dense, (2, 3, 0, 1)).reshape(9, Cin, Cin)  # (tap, out, in)
    wpw = w_pw[:, :, 0, 0].astype(f32)                            # (Cout, Cin)
    M9 = jnp.einsum("oc,tcd->tod", wpw, D9)                       # (9, Cout, Cin)
    m_flat = jnp.transpose(M9, (1, 0, 2)).reshape(Cout, 9 * Cin)  # col t*Cin+ci
    b_fused = (wpw @ b_dw.astype(f32) + b_pw.astype(f32)).reshape(Cout, 1)

    # ---- masks implementing the implicit W padding (wrap-around columns) ----
    wcoord = jnp.arange(HW, dtype=jnp.int32) % W
    masks = jnp.stack([(wcoord != 0), (wcoord != W - 1)]).astype(f32)   # (2, HW)

    # ---- single fused pad of the flattened input: top row + 1 lead, bottom row + tail ----
    lead = W + 1
    Lf = ((HW + 2 * W + 2 + 127) // 128) * 128
    xf = jnp.pad(x.reshape(N, Cin, HW), ((0, 0), (0, 0), (lead, Lf - HW - lead)))

    kernel = functools.partial(_dwsep_kernel, W=W)
    out_flat = pl.pallas_call(
        kernel,
        out_shape=jax.ShapeDtypeStruct((N, Cout, HW), x.dtype),
        grid=(N,),
        in_specs=[
            pl.BlockSpec((1, Cin, Lf), lambda n: (n, 0, 0)),
            pl.BlockSpec((Cout, 9 * Cin), lambda n: (0, 0)),
            pl.BlockSpec((Cout, 1), lambda n: (0, 0)),
            pl.BlockSpec((2, HW), lambda n: (0, 0)),
        ],
        out_specs=pl.BlockSpec((1, Cout, HW), lambda n: (n, 0, 0)),
        compiler_params=pltpu.CompilerParams(dimension_semantics=("parallel",)),
    )(xf, m_flat, b_fused, masks)

    return out_flat.reshape(N, Cout, H, W)                # free reshape; already NCHW


def _reference(x, w_dw, b_dw, w_pw, b_pw, *, padding, groups):
    """Plain-JAX reference identical to the PyTorch forward."""
    y = lax.conv_general_dilated(
        x, w_dw, window_strides=(1, 1),
        padding=[(padding, padding), (padding, padding)],
        feature_group_count=groups,
        dimension_numbers=("NCHW", "OIHW", "NCHW"))
    y = y + b_dw.reshape(1, -1, 1, 1)
    z = lax.conv_general_dilated(
        y, w_pw, window_strides=(1, 1), padding="VALID",
        dimension_numbers=("NCHW", "OIHW", "NCHW"))
    return z + b_pw.reshape(1, -1, 1, 1)


if __name__ == "__main__":
    # Small shapes consistent with the module: groups = out_channels / in_channels.
    N, Cin, Cout, H, W = 2, 4, 8, 16, 16
    padding = 1
    groups = Cout // Cin                                  # = 2

    key = jax.random.PRNGKey(0)
    k1, k2, k3, k4, k5 = jax.random.split(key, 5)
    w_dw = jax.random.normal(k1, (Cin, Cin // groups, 3, 3), jnp.float32) * 0.1
    b_dw = jax.random.normal(k2, (Cin,), jnp.float32) * 0.1
    w_pw = jax.random.normal(k3, (Cout, Cin, 1, 1), jnp.float32) * 0.1
    b_pw = jax.random.normal(k4, (Cout,), jnp.float32) * 0.1
    x = jax.random.normal(k5, (N, Cin, H, W), jnp.float32)

    out = depthwise_separable_conv(x, w_dw, b_dw, w_pw, b_pw, padding=padding)
    out = jax.block_until_ready(out)

    ref = _reference(x, w_dw, b_dw, w_pw, b_pw, padding=padding, groups=groups)
    ref = jax.block_until_ready(ref)

    assert out.shape == (N, Cout, H, W), out.shape
    err = float(jnp.max(jnp.abs(out - ref)))
    assert jnp.allclose(out, ref, rtol=1e-4, atol=1e-4), err
    print("KERNEL_OK")
</pallas_src>

<mosaic_0001>
module attributes {stable_mosaic.version = 11 : i64} {
  func.func @_dwsep_kernel(%arg0: i32, %arg1: memref<1x4x384xf32, #tpu.memory_space<vmem>>, %arg2: memref<8x36xf32, #tpu.memory_space<vmem>>, %arg3: memref<8x1xf32, #tpu.memory_space<vmem>>, %arg4: memref<2x256xf32, #tpu.memory_space<vmem>>, %arg5: memref<1x8x256xf32, #tpu.memory_space<vmem>>) attributes {dimension_semantics = [#tpu.dimension_semantics<parallel>], iteration_bounds = array<i64: 2>, scalar_prefetch = 0 : i64, scratch_operands = 0 : i64, tpu.core_type = #tpu.core_type<tc>, window_params = [{transform_indices = @transform_0, window_bounds = array<i64: 1, 4, 384>}, {pipeline_mode = #tpu.pipeline_mode<synchronous>, transform_indices = @transform_1, window_bounds = array<i64: 8, 36>}, {pipeline_mode = #tpu.pipeline_mode<synchronous>, transform_indices = @transform_2, window_bounds = array<i64: 8, 1>}, {pipeline_mode = #tpu.pipeline_mode<synchronous>, transform_indices = @transform_3, window_bounds = array<i64: 2, 256>}, {transform_indices = @transform_4, window_bounds = array<i64: 1, 8, 256>}]} {
    %c0 = arith.constant 0 : index
    %c0_0 = arith.constant 0 : index
    %c0_1 = arith.constant 0 : index
    %0 = vector.load %arg1[%c0, %c0_0, %c0_1] : memref<1x4x384xf32, #tpu.memory_space<vmem>>, vector<1x4x384xf32>
    %1 = vector.shape_cast %0 : vector<1x4x384xf32> to vector<4x384xf32>
    %c0_2 = arith.constant 0 : index
    %c0_3 = arith.constant 0 : index
    %2 = vector.load %arg2[%c0_2, %c0_3] : memref<8x36xf32, #tpu.memory_space<vmem>>, vector<8x36xf32>
    %c0_4 = arith.constant 0 : index
    %c0_5 = arith.constant 0 : index
    %3 = vector.load %arg4[%c0_4, %c0_5] : memref<2x256xf32, #tpu.memory_space<vmem>>, vector<1x256xf32>
    %c1 = arith.constant 1 : index
    %c0_6 = arith.constant 0 : index
    %4 = vector.load %arg4[%c1, %c0_6] : memref<2x256xf32, #tpu.memory_space<vmem>>, vector<1x256xf32>
    %cst = arith.constant 0.000000e+00 : f32
    %5 = vector.broadcast %cst : f32 to vector<8x256xf32>
    %c0_7 = arith.constant 0 : index
    %c0_8 = arith.constant 0 : index
    %6 = vector.load %arg3[%c0_7, %c0_8] : memref<8x1xf32, #tpu.memory_space<vmem>>, vector<8x1xf32>
    %7 = vector.broadcast %6 : vector<8x1xf32> to vector<8x256xf32>
    %8 = arith.addf %5, %7 : vector<8x256xf32>
    %9 = vector.extract_strided_slice %1 {offsets = [0, 0], sizes = [4, 256], strides = [1, 1]} : vector<4x384xf32> to vector<4x256xf32>
    %10 = vector.broadcast %3 : vector<1x256xf32> to vector<4x256xf32>
    %11 = arith.mulf %9, %10 : vector<4x256xf32>
    %12 = vector.extract_strided_slice %2 {offsets = [0, 0], sizes = [8, 1], strides = [1, 1]} : vector<8x36xf32> to vector<8x1xf32>
    %13 = vector.extract_strided_slice %11 {offsets = [0, 0], sizes = [1, 256], strides = [1, 1]} : vector<4x256xf32> to vector<1x256xf32>
    %14 = vector.broadcast %12 : vector<8x1xf32> to vector<8x256xf32>
    %15 = vector.broadcast %13 : vector<1x256xf32> to vector<8x256xf32>
    %16 = arith.mulf %14, %15 : vector<8x256xf32>
    %17 = arith.addf %8, %16 : vector<8x256xf32>
    %18 = vector.extract_strided_slice %2 {offsets = [0, 1], sizes = [8, 1], strides = [1, 1]} : vector<8x36xf32> to vector<8x1xf32>
    %19 = vector.extract_strided_slice %11 {offsets = [1, 0], sizes = [1, 256], strides = [1, 1]} : vector<4x256xf32> to vector<1x256xf32>
    %20 = vector.broadcast %18 : vector<8x1xf32> to vector<8x256xf32>
    %21 = vector.broadcast %19 : vector<1x256xf32> to vector<8x256xf32>
    %22 = arith.mulf %20, %21 : vector<8x256xf32>
    %23 = arith.addf %17, %22 : vector<8x256xf32>
    %24 = vector.extract_strided_slice %2 {offsets = [0, 2], sizes = [8, 1], strides = [1, 1]} : vector<8x36xf32> to vector<8x1xf32>
    %25 = vector.extract_strided_slice %11 {offsets = [2, 0], sizes = [1, 256], strides = [1, 1]} : vector<4x256xf32> to vector<1x256xf32>
    %26 = vector.broadcast %24 : vector<8x1xf32> to vector<8x256xf32>
    %27 = vector.broadcast %25 : vector<1x256xf32> to vector<8x256xf32>
    %28 = arith.mulf %26, %27 : vector<8x256xf32>
    %29 = arith.addf %23, %28 : vector<8x256xf32>
    %30 = vector.extract_strided_slice %2 {offsets = [0, 3], sizes = [8, 1], strides = [1, 1]} : vector<8x36xf32> to vector<8x1xf32>
    %31 = vector.extract_strided_slice %11 {offsets = [3, 0], sizes = [1, 256], strides = [1, 1]} : vector<4x256xf32> to vector<1x256xf32>
    %32 = vector.broadcast %30 : vector<8x1xf32> to vector<8x256xf32>
    %33 = vector.broadcast %31 : vector<1x256xf32> to vector<8x256xf32>
    %34 = arith.mulf %32, %33 : vector<8x256xf32>
    %35 = arith.addf %29, %34 : vector<8x256xf32>
    %36 = vector.extract_strided_slice %1 {offsets = [0, 1], sizes = [4, 256], strides = [1, 1]} : vector<4x384xf32> to vector<4x256xf32>
    %37 = vector.extract_strided_slice %2 {offsets = [0, 4], sizes = [8, 1], strides = [1, 1]} : vector<8x36xf32> to vector<8x1xf32>
    %38 = vector.extract_strided_slice %36 {offsets = [0, 0], sizes = [1, 256], strides = [1, 1]} : vector<4x256xf32> to vector<1x256xf32>
    %39 = vector.broadcast %37 : vector<8x1xf32> to vector<8x256xf32>
    %40 = vector.broadcast %38 : vector<1x256xf32> to vector<8x256xf32>
    %41 = arith.mulf %39, %40 : vector<8x256xf32>
    %42 = arith.addf %35, %41 : vector<8x256xf32>
    %43 = vector.extract_strided_slice %2 {offsets = [0, 5], sizes = [8, 1], strides = [1, 1]} : vector<8x36xf32> to vector<8x1xf32>
    %44 = vector.extract_strided_slice %36 {offsets = [1, 0], sizes = [1, 256], strides = [1, 1]} : vector<4x256xf32> to vector<1x256xf32>
    %45 = vector.broadcast %43 : vector<8x1xf32> to vector<8x256xf32>
    %46 = vector.broadcast %44 : vector<1x256xf32> to vector<8x256xf32>
    %47 = arith.mulf %45, %46 : vector<8x256xf32>
    %48 = arith.addf %42, %47 : vector<8x256xf32>
    %49 = vector.extract_strided_slice %2 {offsets = [0, 6], sizes = [8, 1], strides = [1, 1]} : vector<8x36xf32> to vector<8x1xf32>
    %50 = vector.extract_strided_slice %36 {offsets = [2, 0], sizes = [1, 256], strides = [1, 1]} : vector<4x256xf32> to vector<1x256xf32>
    %51 = vector.broadcast %49 : vector<8x1xf32> to vector<8x256xf32>
    %52 = vector.broadcast %50 : vector<1x256xf32> to vector<8x256xf32>
    %53 = arith.mulf %51, %52 : vector<8x256xf32>
    %54 = arith.addf %48, %53 : vector<8x256xf32>
    %55 = vector.extract_strided_slice %2 {offsets = [0, 7], sizes = [8, 1], strides = [1, 1]} : vector<8x36xf32> to vector<8x1xf32>
    %56 = vector.extract_strided_slice %36 {offsets = [3, 0], sizes = [1, 256], strides = [1, 1]} : vector<4x256xf32> to vector<1x256xf32>
    %57 = vector.broadcast %55 : vector<8x1xf32> to vector<8x256xf32>
    %58 = vector.broadcast %56 : vector<1x256xf32> to vector<8x256xf32>
    %59 = arith.mulf %57, %58 : vector<8x256xf32>
    %60 = arith.addf %54, %59 : vector<8x256xf32>
    %61 = vector.extract_strided_slice %1 {offsets = [0, 2], sizes = [4, 256], strides = [1, 1]} : vector<4x384xf32> to vector<4x256xf32>
    %62 = vector.broadcast %4 : vector<1x256xf32> to vector<4x256xf32>
    %63 = arith.mulf %61, %62 : vector<4x256xf32>
    %64 = vector.extract_strided_slice %2 {offsets = [0, 8], sizes = [8, 1], strides = [1, 1]} : vector<8x36xf32> to vector<8x1xf32>
    %65 = vector.extract_strided_slice %63 {offsets = [0, 0], sizes = [1, 256], strides = [1, 1]} : vector<4x256xf32> to vector<1x256xf32>
    %66 = vector.broadcast %64 : vector<8x1xf32> to vector<8x256xf32>
    %67 = vector.broadcast %65 : vector<1x256xf32> to vector<8x256xf32>
    %68 = arith.mulf %66, %67 : vector<8x256xf32>
    %69 = arith.addf %60, %68 : vector<8x256xf32>
    %70 = vector.extract_strided_slice %2 {offsets = [0, 9], sizes = [8, 1], strides = [1, 1]} : vector<8x36xf32> to vector<8x1xf32>
    %71 = vector.extract_strided_slice %63 {offsets = [1, 0], sizes = [1, 256], strides = [1, 1]} : vector<4x256xf32> to vector<1x256xf32>
    %72 = vector.broadcast %70 : vector<8x1xf32> to vector<8x256xf32>
    %73 = vector.broadcast %71 : vector<1x256xf32> to vector<8x256xf32>
    %74 = arith.mulf %72, %73 : vector<8x256xf32>
    %75 = arith.addf %69, %74 : vector<8x256xf32>
    %76 = vector.extract_strided_slice %2 {offsets = [0, 10], sizes = [8, 1], strides = [1, 1]} : vector<8x36xf32> to vector<8x1xf32>
    %77 = vector.extract_strided_slice %63 {offsets = [2, 0], sizes = [1, 256], strides = [1, 1]} : vector<4x256xf32> to vector<1x256xf32>
    %78 = vector.broadcast %76 : vector<8x1xf32> to vector<8x256xf32>
    %79 = vector.broadcast %77 : vector<1x256xf32> to vector<8x256xf32>
    %80 = arith.mulf %78, %79 : vector<8x256xf32>
    %81 = arith.addf %75, %80 : vector<8x256xf32>
    %82 = vector.extract_strided_slice %2 {offsets = [0, 11], sizes = [8, 1], strides = [1, 1]} : vector<8x36xf32> to vector<8x1xf32>
    %83 = vector.extract_strided_slice %63 {offsets = [3, 0], sizes = [1, 256], strides = [1, 1]} : vector<4x256xf32> to vector<1x256xf32>
    %84 = vector.broadcast %82 : vector<8x1xf32> to vector<8x256xf32>
    %85 = vector.broadcast %83 : vector<1x256xf32> to vector<8x256xf32>
    %86 = arith.mulf %84, %85 : vector<8x256xf32>
    %87 = arith.addf %81, %86 : vector<8x256xf32>
    %88 = vector.extract_strided_slice %1 {offsets = [0, 16], sizes = [4, 256], strides = [1, 1]} : vector<4x384xf32> to vector<4x256xf32>
    %89 = vector.broadcast %3 : vector<1x256xf32> to vector<4x256xf32>
    %90 = arith.mulf %88, %89 : vector<4x256xf32>
    %91 = vector.extract_strided_slice %2 {offsets = [0, 12], sizes = [8, 1], strides = [1, 1]} : vector<8x36xf32> to vector<8x1xf32>
    %92 = vector.extract_strided_slice %90 {offsets = [0, 0], sizes = [1, 256], strides = [1, 1]} : vector<4x256xf32> to vector<1x256xf32>
    %93 = vector.broadcast %91 : vector<8x1xf32> to vector<8x256xf32>
    %94 = vector.broadcast %92 : vector<1x256xf32> to vector<8x256xf32>
    %95 = arith.mulf %93, %94 : vector<8x256xf32>
    %96 = arith.addf %87, %95 : vector<8x256xf32>
    %97 = vector.extract_strided_slice %2 {offsets = [0, 13], sizes = [8, 1], strides = [1, 1]} : vector<8x36xf32> to vector<8x1xf32>
    %98 = vector.extract_strided_slice %90 {offsets = [1, 0], sizes = [1, 256], strides = [1, 1]} : vector<4x256xf32> to vector<1x256xf32>
    %99 = vector.broadcast %97 : vector<8x1xf32> to vector<8x256xf32>
    %100 = vector.broadcast %98 : vector<1x256xf32> to vector<8x256xf32>
    %101 = arith.mulf %99, %100 : vector<8x256xf32>
    %102 = arith.addf %96, %101 : vector<8x256xf32>
    %103 = vector.extract_strided_slice %2 {offsets = [0, 14], sizes = [8, 1], strides = [1, 1]} : vector<8x36xf32> to vector<8x1xf32>
    %104 = vector.extract_strided_slice %90 {offsets = [2, 0], sizes = [1, 256], strides = [1, 1]} : vector<4x256xf32> to vector<1x256xf32>
    %105 = vector.broadcast %103 : vector<8x1xf32> to vector<8x256xf32>
    %106 = vector.broadcast %104 : vector<1x256xf32> to vector<8x256xf32>
    %107 = arith.mulf %105, %106 : vector<8x256xf32>
    %108 = arith.addf %102, %107 : vector<8x256xf32>
    %109 = vector.extract_strided_slice %2 {offsets = [0, 15], sizes = [8, 1], strides = [1, 1]} : vector<8x36xf32> to vector<8x1xf32>
    %110 = vector.extract_strided_slice %90 {offsets = [3, 0], sizes = [1, 256], strides = [1, 1]} : vector<4x256xf32> to vector<1x256xf32>
    %111 = vector.broadcast %109 : vector<8x1xf32> to vector<8x256xf32>
    %112 = vector.broadcast %110 : vector<1x256xf32> to vector<8x256xf32>
    %113 = arith.mulf %111, %112 : vector<8x256xf32>
    %114 = arith.addf %108, %113 : vector<8x256xf32>
    %115 = vector.extract_strided_slice %1 {offsets = [0, 17], sizes = [4, 256], strides = [1, 1]} : vector<4x384xf32> to vector<4x256xf32>
    %116 = vector.extract_strided_slice %2 {offsets = [0, 16], sizes = [8, 1], strides = [1, 1]} : vector<8x36xf32> to vector<8x1xf32>
    %117 = vector.extract_strided_slice %115 {offsets = [0, 0], sizes = [1, 256], strides = [1, 1]} : vector<4x256xf32> to vector<1x256xf32>
    %118 = vector.broadcast %116 : vector<8x1xf32> to vector<8x256xf32>
    %119 = vector.broadcast %117 : vector<1x256xf32> to vector<8x256xf32>
    %120 = arith.mulf %118, %119 : vector<8x256xf32>
    %121 = arith.addf %114, %120 : vector<8x256xf32>
    %122 = vector.extract_strided_slice %2 {offsets = [0, 17], sizes = [8, 1], strides = [1, 1]} : vector<8x36xf32> to vector<8x1xf32>
    %123 = vector.extract_strided_slice %115 {offsets = [1, 0], sizes = [1, 256], strides = [1, 1]} : vector<4x256xf32> to vector<1x256xf32>
    %124 = vector.broadcast %122 : vector<8x1xf32> to vector<8x256xf32>
    %125 = vector.broadcast %123 : vector<1x256xf32> to vector<8x256xf32>
    %126 = arith.mulf %124, %125 : vector<8x256xf32>
    %127 = arith.addf %121, %126 : vector<8x256xf32>
    %128 = vector.extract_strided_slice %2 {offsets = [0, 18], sizes = [8, 1], strides = [1, 1]} : vector<8x36xf32> to vector<8x1xf32>
    %129 = vector.extract_strided_slice %115 {offsets = [2, 0], sizes = [1, 256], strides = [1, 1]} : vector<4x256xf32> to vector<1x256xf32>
    %130 = vector.broadcast %128 : vector<8x1xf32> to vector<8x256xf32>
    %131 = vector.broadcast %129 : vector<1x256xf32> to vector<8x256xf32>
    %132 = arith.mulf %130, %131 : vector<8x256xf32>
    %133 = arith.addf %127, %132 : vector<8x256xf32>
    %134 = vector.extract_strided_slice %2 {offsets = [0, 19], sizes = [8, 1], strides = [1, 1]} : vector<8x36xf32> to vector<8x1xf32>
    %135 = vector.extract_strided_slice %115 {offsets = [3, 0], sizes = [1, 256], strides = [1, 1]} : vector<4x256xf32> to vector<1x256xf32>
    %136 = vector.broadcast %134 : vector<8x1xf32> to vector<8x256xf32>
    %137 = vector.broadcast %135 : vector<1x256xf32> to vector<8x256xf32>
    %138 = arith.mulf %136, %137 : vector<8x256xf32>
    %139 = arith.addf %133, %138 : vector<8x256xf32>
    %140 = vector.extract_strided_slice %1 {offsets = [0, 18], sizes = [4, 256], strides = [1, 1]} : vector<4x384xf32> to vector<4x256xf32>
    %141 = vector.broadcast %4 : vector<1x256xf32> to vector<4x256xf32>
    %142 = arith.mulf %140, %141 : vector<4x256xf32>
    %143 = vector.extract_strided_slice %2 {offsets = [0, 20], sizes = [8, 1], strides = [1, 1]} : vector<8x36xf32> to vector<8x1xf32>
    %144 = vector.extract_strided_slice %142 {offsets = [0, 0], sizes = [1, 256], strides = [1, 1]} : vector<4x256xf32> to vector<1x256xf32>
    %145 = vector.broadcast %143 : vector<8x1xf32> to vector<8x256xf32>
    %146 = vector.broadcast %144 : vector<1x256xf32> to vector<8x256xf32>
    %147 = arith.mulf %145, %146 : vector<8x256xf32>
    %148 = arith.addf %139, %147 : vector<8x256xf32>
    %149 = vector.extract_strided_slice %2 {offsets = [0, 21], sizes = [8, 1], strides = [1, 1]} : vector<8x36xf32> to vector<8x1xf32>
    %150 = vector.extract_strided_slice %142 {offsets = [1, 0], sizes = [1, 256], strides = [1, 1]} : vector<4x256xf32> to vector<1x256xf32>
    %151 = vector.broadcast %149 : vector<8x1xf32> to vector<8x256xf32>
    %152 = vector.broadcast %150 : vector<1x256xf32> to vector<8x256xf32>
    %153 = arith.mulf %151, %152 : vector<8x256xf32>
    %154 = arith.addf %148, %153 : vector<8x256xf32>
    %155 = vector.extract_strided_slice %2 {offsets = [0, 22], sizes = [8, 1], strides = [1, 1]} : vector<8x36xf32> to vector<8x1xf32>
    %156 = vector.extract_strided_slice %142 {offsets = [2, 0], sizes = [1, 256], strides = [1, 1]} : vector<4x256xf32> to vector<1x256xf32>
    %157 = vector.broadcast %155 : vector<8x1xf32> to vector<8x256xf32>
    %158 = vector.broadcast %156 : vector<1x256xf32> to vector<8x256xf32>
    %159 = arith.mulf %157, %158 : vector<8x256xf32>
    %160 = arith.addf %154, %159 : vector<8x256xf32>
    %161 = vector.extract_strided_slice %2 {offsets = [0, 23], sizes = [8, 1], strides = [1, 1]} : vector<8x36xf32> to vector<8x1xf32>
    %162 = vector.extract_strided_slice %142 {offsets = [3, 0], sizes = [1, 256], strides = [1, 1]} : vector<4x256xf32> to vector<1x256xf32>
    %163 = vector.broadcast %161 : vector<8x1xf32> to vector<8x256xf32>
    %164 = vector.broadcast %162 : vector<1x256xf32> to vector<8x256xf32>
    %165 = arith.mulf %163, %164 : vector<8x256xf32>
    %166 = arith.addf %160, %165 : vector<8x256xf32>
    %167 = vector.extract_strided_slice %1 {offsets = [0, 32], sizes = [4, 256], strides = [1, 1]} : vector<4x384xf32> to vector<4x256xf32>
    %168 = vector.broadcast %3 : vector<1x256xf32> to vector<4x256xf32>
    %169 = arith.mulf %167, %168 : vector<4x256xf32>
    %170 = vector.extract_strided_slice %2 {offsets = [0, 24], sizes = [8, 1], strides = [1, 1]} : vector<8x36xf32> to vector<8x1xf32>
    %171 = vector.extract_strided_slice %169 {offsets = [0, 0], sizes = [1, 256], strides = [1, 1]} : vector<4x256xf32> to vector<1x256xf32>
    %172 = vector.broadcast %170 : vector<8x1xf32> to vector<8x256xf32>
    %173 = vector.broadcast %171 : vector<1x256xf32> to vector<8x256xf32>
    %174 = arith.mulf %172, %173 : vector<8x256xf32>
    %175 = arith.addf %166, %174 : vector<8x256xf32>
    %176 = vector.extract_strided_slice %2 {offsets = [0, 25], sizes = [8, 1], strides = [1, 1]} : vector<8x36xf32> to vector<8x1xf32>
    %177 = vector.extract_strided_slice %169 {offsets = [1, 0], sizes = [1, 256], strides = [1, 1]} : vector<4x256xf32> to vector<1x256xf32>
    %178 = vector.broadcast %176 : vector<8x1xf32> to vector<8x256xf32>
    %179 = vector.broadcast %177 : vector<1x256xf32> to vector<8x256xf32>
    %180 = arith.mulf %178, %179 : vector<8x256xf32>
    %181 = arith.addf %175, %180 : vector<8x256xf32>
    %182 = vector.extract_strided_slice %2 {offsets = [0, 26], sizes = [8, 1], strides = [1, 1]} : vector<8x36xf32> to vector<8x1xf32>
    %183 = vector.extract_strided_slice %169 {offsets = [2, 0], sizes = [1, 256], strides = [1, 1]} : vector<4x256xf32> to vector<1x256xf32>
    %184 = vector.broadcast %182 : vector<8x1xf32> to vector<8x256xf32>
    %185 = vector.broadcast %183 : vector<1x256xf32> to vector<8x256xf32>
    %186 = arith.mulf %184, %185 : vector<8x256xf32>
    %187 = arith.addf %181, %186 : vector<8x256xf32>
    %188 = vector.extract_strided_slice %2 {offsets = [0, 27], sizes = [8, 1], strides = [1, 1]} : vector<8x36xf32> to vector<8x1xf32>
    %189 = vector.extract_strided_slice %169 {offsets = [3, 0], sizes = [1, 256], strides = [1, 1]} : vector<4x256xf32> to vector<1x256xf32>
    %190 = vector.broadcast %188 : vector<8x1xf32> to vector<8x256xf32>
    %191 = vector.broadcast %189 : vector<1x256xf32> to vector<8x256xf32>
    %192 = arith.mulf %190, %191 : vector<8x256xf32>
    %193 = arith.addf %187, %192 : vector<8x256xf32>
    %194 = vector.extract_strided_slice %1 {offsets = [0, 33], sizes = [4, 256], strides = [1, 1]} : vector<4x384xf32> to vector<4x256xf32>
    %195 = vector.extract_strided_slice %2 {offsets = [0, 28], sizes = [8, 1], strides = [1, 1]} : vector<8x36xf32> to vector<8x1xf32>
    %196 = vector.extract_strided_slice %194 {offsets = [0, 0], sizes = [1, 256], strides = [1, 1]} : vector<4x256xf32> to vector<1x256xf32>
    %197 = vector.broadcast %195 : vector<8x1xf32> to vector<8x256xf32>
    %198 = vector.broadcast %196 : vector<1x256xf32> to vector<8x256xf32>
    %199 = arith.mulf %197, %198 : vector<8x256xf32>
    %200 = arith.addf %193, %199 : vector<8x256xf32>
    %201 = vector.extract_strided_slice %2 {offsets = [0, 29], sizes = [8, 1], strides = [1, 1]} : vector<8x36xf32> to vector<8x1xf32>
    %202 = vector.extract_strided_slice %194 {offsets = [1, 0], sizes = [1, 256], strides = [1, 1]} : vector<4x256xf32> to vector<1x256xf32>
    %203 = vector.broadcast %201 : vector<8x1xf32> to vector<8x256xf32>
    %204 = vector.broadcast %202 : vector<1x256xf32> to vector<8x256xf32>
    %205 = arith.mulf %203, %204 : vector<8x256xf32>
    %206 = arith.addf %200, %205 : vector<8x256xf32>
    %207 = vector.extract_strided_slice %2 {offsets = [0, 30], sizes = [8, 1], strides = [1, 1]} : vector<8x36xf32> to vector<8x1xf32>
    %208 = vector.extract_strided_slice %194 {offsets = [2, 0], sizes = [1, 256], strides = [1, 1]} : vector<4x256xf32> to vector<1x256xf32>
    %209 = vector.broadcast %207 : vector<8x1xf32> to vector<8x256xf32>
    %210 = vector.broadcast %208 : vector<1x256xf32> to vector<8x256xf32>
    %211 = arith.mulf %209, %210 : vector<8x256xf32>
    %212 = arith.addf %206, %211 : vector<8x256xf32>
    %213 = vector.extract_strided_slice %2 {offsets = [0, 31], sizes = [8, 1], strides = [1, 1]} : vector<8x36xf32> to vector<8x1xf32>
    %214 = vector.extract_strided_slice %194 {offsets = [3, 0], sizes = [1, 256], strides = [1, 1]} : vector<4x256xf32> to vector<1x256xf32>
    %215 = vector.broadcast %213 : vector<8x1xf32> to vector<8x256xf32>
    %216 = vector.broadcast %214 : vector<1x256xf32> to vector<8x256xf32>
    %217 = arith.mulf %215, %216 : vector<8x256xf32>
    %218 = arith.addf %212, %217 : vector<8x256xf32>
    %219 = vector.extract_strided_slice %1 {offsets = [0, 34], sizes = [4, 256], strides = [1, 1]} : vector<4x384xf32> to vector<4x256xf32>
    %220 = vector.broadcast %4 : vector<1x256xf32> to vector<4x256xf32>
    %221 = arith.mulf %219, %220 : vector<4x256xf32>
    %222 = vector.extract_strided_slice %2 {offsets = [0, 32], sizes = [8, 1], strides = [1, 1]} : vector<8x36xf32> to vector<8x1xf32>
    %223 = vector.extract_strided_slice %221 {offsets = [0, 0], sizes = [1, 256], strides = [1, 1]} : vector<4x256xf32> to vector<1x256xf32>
    %224 = vector.broadcast %222 : vector<8x1xf32> to vector<8x256xf32>
    %225 = vector.broadcast %223 : vector<1x256xf32> to vector<8x256xf32>
    %226 = arith.mulf %224, %225 : vector<8x256xf32>
    %227 = arith.addf %218, %226 : vector<8x256xf32>
    %228 = vector.extract_strided_slice %2 {offsets = [0, 33], sizes = [8, 1], strides = [1, 1]} : vector<8x36xf32> to vector<8x1xf32>
    %229 = vector.extract_strided_slice %221 {offsets = [1, 0], sizes = [1, 256], strides = [1, 1]} : vector<4x256xf32> to vector<1x256xf32>
    %230 = vector.broadcast %228 : vector<8x1xf32> to vector<8x256xf32>
    %231 = vector.broadcast %229 : vector<1x256xf32> to vector<8x256xf32>
    %232 = arith.mulf %230, %231 : vector<8x256xf32>
    %233 = arith.addf %227, %232 : vector<8x256xf32>
    %234 = vector.extract_strided_slice %2 {offsets = [0, 34], sizes = [8, 1], strides = [1, 1]} : vector<8x36xf32> to vector<8x1xf32>
    %235 = vector.extract_strided_slice %221 {offsets = [2, 0], sizes = [1, 256], strides = [1, 1]} : vector<4x256xf32> to vector<1x256xf32>
    %236 = vector.broadcast %234 : vector<8x1xf32> to vector<8x256xf32>
    %237 = vector.broadcast %235 : vector<1x256xf32> to vector<8x256xf32>
    %238 = arith.mulf %236, %237 : vector<8x256xf32>
    %239 = arith.addf %233, %238 : vector<8x256xf32>
    %240 = vector.extract_strided_slice %2 {offsets = [0, 35], sizes = [8, 1], strides = [1, 1]} : vector<8x36xf32> to vector<8x1xf32>
    %241 = vector.extract_strided_slice %221 {offsets = [3, 0], sizes = [1, 256], strides = [1, 1]} : vector<4x256xf32> to vector<1x256xf32>
    %242 = vector.broadcast %240 : vector<8x1xf32> to vector<8x256xf32>
    %243 = vector.broadcast %241 : vector<1x256xf32> to vector<8x256xf32>
    %244 = arith.mulf %242, %243 : vector<8x256xf32>
    %245 = arith.addf %239, %244 : vector<8x256xf32>
    %c0_9 = arith.constant 0 : index
    %c0_10 = arith.constant 0 : index
    %c0_11 = arith.constant 0 : index
    %246 = vector.load %arg5[%c0_9, %c0_10, %c0_11] : memref<1x8x256xf32, #tpu.memory_space<vmem>>, vector<1x8x256xf32>
    %247 = vector.shape_cast %246 : vector<1x8x256xf32> to vector<8x256xf32>
    %248 = vector.shape_cast %245 : vector<8x256xf32> to vector<1x8x256xf32>
    tpu.vector_store %arg5[%c0_9, %c0_10, %c0_11], %248 {strides = array<i32>} : memref<1x8x256xf32, #tpu.memory_space<vmem>>, vector<1x8x256xf32>,
    return
  }
  func.func @transform_0(%arg0: i32) -> (i32, i32, i32) {
    %c0_i32 = arith.constant 0 : i32
    %c0_i32_0 = arith.constant 0 : i32
    %c0_i32_1 = arith.constant 0 : i32
    return %arg0, %c0_i32, %c0_i32_0 : i32, i32, i32
  }
  func.func @transform_1(%arg0: i32) -> (i32, i32) {
    %c0_i32 = arith.constant 0 : i32
    %c0_i32_0 = arith.constant 0 : i32
    %c0_i32_1 = arith.constant 0 : i32
    return %c0_i32, %c0_i32_0 : i32, i32
  }
  func.func @transform_2(%arg0: i32) -> (i32, i32) {
    %c0_i32 = arith.constant 0 : i32
    %c0_i32_0 = arith.constant 0 : i32
    %c0_i32_1 = arith.constant 0 : i32
    return %c0_i32, %c0_i32_0 : i32, i32
  }
  func.func @transform_3(%arg0: i32) -> (i32, i32) {
    %c0_i32 = arith.constant 0 : i32
    %c0_i32_0 = arith.constant 0 : i32
    %c0_i32_1 = arith.constant 0 : i32
    return %c0_i32, %c0_i32_0 : i32, i32
  }
  func.func @transform_4(%arg0: i32) -> (i32, i32, i32) {
    %c0_i32 = arith.constant 0 : i32
    %c0_i32_0 = arith.constant 0 : i32
    %c0_i32_1 = arith.constant 0 : i32
    return %arg0, %c0_i32, %c0_i32_0 : i32, i32, i32
  }
}

</mosaic_0001>

<bundles_post_ra>
// kernel: depthwise_separable_conv.1
= control target key start
LH: loop header
LB: loop body
LE: loop exit
PB: predicated region body
PF: predicated region fallthrough
CT: control target
= control target key end

     0   :  { %s2005_s15 = smov 0   ;;  %s2731_s0 = inlined_call_operand.vmem [shape: f32[2,4,384], index: 0, kind: input, shape index: {}]   ;;  %s2732_s1 = inlined_call_operand.vmem [shape: f32[8,36], index: 1, kind: input, shape index: {}]   ;;  %s2733_s2 = inlined_call_operand.vmem [shape: f32[8,1], index: 2, kind: input, shape index: {}]   ;;  %s2734_s3 = inlined_call_operand.vmem [shape: f32[2,256], index: 3, kind: input, shape index: {}]   ;;  %s2735_s4 = inlined_call_operand.vmem [shape: f32[2,8,256], index: 4, kind: output, shape index: {}]  }
   0x1 LB: > { %s1813_s16 = sadd.s32 4294967295, %s1929_s15   ;;  %p1817_p0 = scmp.ge.s32.totalorder %s1929_s15, 1  ;;  %s1929_s15 = sphi %s2005_s15, %s14_s15  }
   0x2   : > { %p162_p1 = scmp.lt.s32.totalorder %s1929_s15, 3 }
   0x4   : > { %p163_p2 = pnand %p1817_p0, %p162_p1 }
   0x6   : > { %166 = sbr.rel (%p163_p2) target bundleno = 866 (0x362), region = 36 }
   0xd   : > { %v204_v0 = vld [vmem:[%s2733_s2] sm:$0xff]  ;;  %v1931_v2 = vmov 1   ;;  %v1932_v3 = vmov 0   ;;  %v1933_v4 = vmov 2   ;;  %v212_v5 = vlaneseq  ;;  %s1941_s23 = smov 2   ;;  %s1945_s26 = smov 16  }
   0xe   : > { %v2019_v1 = vld [vmem:[%s2732_s1] sm:$0xff]  ;;  %1884 = vset.pattern.permute.xlu1 %v1931_v2  ;;  %1883 = vset.pattern.permute.xlu0 %v1932_v3  ;;  %v1934_v6 = vmov 3   ;;  %v1935_v8 = vmov 4   ;;  %v1936_v11 = vmov 5   ;;  %v1937_v13 = vmov 6   ;;  %p188_p3 = scmp.lt.s32.totalorder %s1813_s16, 1 }
   0xf   : > { %207 = vperm.xlu0 %1883, %v204_v0   ;;  %252 = vperm.xlu1 %1884, %v2019_v1   ;;  %v2024_v7 = vshrl.u32 %v212_v5, 7  ;;  %v1821_v12 = vld [vmem:[%s2734_s3 + $0x1] ss:$2 sm:$0x3]  ;;  %v1938_v16 = vmov 8   ;;  %v1939_v17 = vmov 7  }
  0x10   : > { %v1940_v19 = vmov 12   ;;  %v1942_v20 = vmov 9   ;;  %v201_v21 = vld [vmem:[%s2734_s3] ss:$2 sm:$0x3]  ;;  %v1943_v22 = vmov 10  }
  0x11   : > { %v2029_v9 = vsub.s32 0, %v2024_v7  ;;  %v2032_v10 = vsub.s32 1, %v2024_v7  ;;  %v1944_v25 = vmov 11   ;;  %v1946_v27 = vmov 13   ;;  %s2746_s16 = smov (!%p188_p3, %s1813_s16), 1  ;;  %s1953_s5 = smov 127  }
  0x12   : > { %v1947_v28 = vmov 14   ;;  %v1948_v29 = vmov 15   ;;  %v1949_v30 = vmov 16   ;;  %v1950_v31 = vmov 17   ;;  %s1825_s27 = smul.u32 12, %s2746_s16  ;;  %s1954_s6 = smov 111  }
  0x13   : > { %1885 = vset.pattern.permute.xlu1 %v1933_v4  ;;  %225 = vperm.xlu0 %1883, %v2019_v1   ;;  %v532_v14 = vrot.slane %v1821_v12, %v2029_v9  ;;  %v536_v15 = vrot.slane %v1821_v12, %v2032_v10  ;;  %v215_v23 = vrot.slane %v201_v21, %v2029_v9  ;;  %v1951_v32 = vmov 18   ;;  %s1955_s7 = smov 126   ;;  %s1956_s8 = smov 112  }
  0x14   : > { %278 = vperm.xlu1 %1885, %v2019_v1   ;;  %v219_v24 = vrot.slane %v201_v21, %v2032_v10  ;;  %v1952_v33 = vmov 19   ;;  %s2074_s30 = scalar_lea.vmem %s2731_s0, %s1825_s27  ;;  %v2081_v36 = vsub.s32 4, %v2024_v7  ;;  %v2108_v47 = vsub.s32 2, %v2024_v7  ;;  %s1958_s9 = smov 18  }
  0x15   : > { %v2043_v18 = vcombine.low %v532_v14, %v536_v15  ;;  %v2084_v37 = vld [vmem:[%s2074_s30] sm:$0xff]  ;;  %v2091_v40 = vld [vmem:[%s2074_s30 + $0x8] sm:$0xf]  ;;  %v2115_v50 = vsub.s32 5, %v2024_v7  ;;  %v2142_v2 = vsub.s32 6, %v2024_v7  ;;  %v2145_v3 = vsub.s32 3, %v2024_v7 }
  0x16   : > { %v2055_v26 = vcombine.low %v215_v23, %v219_v24  ;;  %v342_v38 = vrot.slane %v2084_v37, %v2081_v36  ;;  %v338_v39 = vrot.slane %v2084_v37, %v2029_v9  ;;  %v346_v43 = vrot.slane %v2091_v40, %v2029_v9  ;;  %s1961_s10 = smov 32   ;;  %s1967_s11 = smov 110  }
  0x17   : > { %1886 = vset.pattern.permute.xlu0 %v1934_v6  ;;  %v396_v46 = vrot.slane %v2091_v40, %v2032_v10  ;;  %v388_v49 = vrot.slane %v2084_v37, %v2032_v10  ;;  %v437_v56 = vrot.slane %v2084_v37, %v2108_v47  ;;  %v392_v58 = vrot.slane %v2084_v37, %v2115_v50  ;;  %s1974_s12 = smov 34   ;;  %s1977_s17 = smov 96  }
  0x18   : > { %1887 = vset.pattern.permute.xlu1 %v1935_v8  ;;  %304 = vperm.xlu0 %1886, %v2019_v1   ;;  %v2100_v44 = vrot.slane %v342_v38, %v2029_v9  ;;  %v2103_v45 = vrot.slane %v338_v39, %v2029_v9  ;;  %v2118_v52 = vrot.slane %v346_v43, %v2029_v9  ;;  %v2162_v14 = vsub.s32 7, %v2024_v7  ;;  %s1978_s18 = smov 95   ;;  %s1979_s19 = smov 94  }
  0x19   : > { %330 = vperm.xlu1 %1887, %v2019_v1   ;;  %v2123_v55 = vrot.slane %v396_v46, %v2032_v10  ;;  %v2130_v57 = vrot.slane %v388_v49, %v2032_v10  ;;  %v2137_v63 = vrot.slane %v437_v56, %v2108_v47  ;;  %v445_v0 = vrot.slane %v2091_v40, %v2108_v47  ;;  %s1824_s20 = sshll.u32 %s2746_s16, 4 }
  0x1a   : > { %v2151_v5 = vrot.slane %v392_v58, %v2032_v10  ;;  %v441_v12 = vrot.slane %v2084_v37, %v2142_v2  ;;  %v490_v7 = vrot.slane %v2084_v37, %v2162_v14  ;;  %vm541_vm0 = vcmask 15360  }
  0x1b   : > { %2739 = vst [vmem:[#allocation2_spill] sm:$0xff] %v2137_v63  ;;  %v2155_v8 = vrot.slane %v445_v0, %v2108_v47  ;;  %vm749_vm1 = vcmask 130048   ;;  %vm374_vm2 = vcmask 1039360   ;;  %vm592_vm3 = vcmask 1031168  }
  0x1c   : > { %1888 = vset.pattern.permute.xlu0 %v1936_v11  ;;  %v486_v11 = vrot.slane %v2084_v37, %v2145_v3  ;;  %vm800_vm4 = vcmask 916480   ;;  %vm970_vm5 = vcmask 908288   ;;  %vm1046_vm6 = vcmask 146432  }
  0x1d   : > { %1889 = vset.pattern.permute.xlu1 %v1937_v13  ;;  %382 = vperm.xlu0 %1888, %v2019_v1   ;;  %2740 = vst [vmem:[#allocation3_spill] sm:$0xff] %v2155_v8  ;;  %vm1097_vm7 = vcmask 900096   ;;  %vm1254_vm8 = vcmask 261120   ;;  %vm1551_vm9 = vcmask 277504   ;;  %vm1305_vm10 = vcmask 785408  }
  0x1e   : > { %431 = vperm.xlu1 %1889, %v2019_v1   ;;  %vm1475_vm11 = vcmask 777216   ;;  %vm1602_vm12 = vcmask 769024  }
  0x21   : > { %1891 = vset.pattern.permute.xlu0 %v1938_v16  ;;  %v494_v16 = vrot.slane %v2091_v40, %v2145_v3 }
  0x22   : > { %1890 = vset.pattern.permute.xlu1 %v1939_v17  ;;  %548 = vperm.xlu0 %1891, %v2019_v1  }
  0x23   : > { %480 = vperm.xlu1 %1890, %v2019_v1   ;;  %v2183_v24 = vrot.slane %v494_v16, %v2145_v3 }
  0x26   : > { %1895 = vset.pattern.permute.xlu0 %v1940_v19  ;;  %v2171_v19 = vrot.slane %v486_v11, %v2145_v3 }
  0x27   : > { %538 = vrot.lane.b32.xlu1 %v2043_v18, %s1941_s23  ;;  %756 = vperm.xlu0 %1895, %v2019_v1   ;;  %s197_s23 = scalar_lea.vmem %s2735_s4, %s1824_s20 }
  0x28   : > { %1892 = vset.pattern.permute.xlu1 %v1942_v20  ;;  %v2174_v20 = vrot.slane %v441_v12, %v2108_v47 }
  0x2a   : > { %2741 = vst [vmem:[#allocation4_spill] sm:$0xff] %v2174_v20 }
  0x2b   : > { %600 = vperm.xlu1 %1892, %v2019_v1  }
  0x2f   : > { %1893 = vset.pattern.permute.xlu1 %v1943_v22 }
  0x30   : > { %649 = vperm.xlu1 %1893, %v2019_v1  }
  0x34   : > { %1894 = vset.pattern.permute.xlu1 %v1944_v25  ;;  %v2186_v25 = vrot.slane %v490_v7, %v2145_v3 }
  0x35   : > { %698 = vperm.xlu1 %1894, %v2019_v1  }
  0x39   : > { %746 = vrot.lane.b32.xlu1 %v2055_v26, %s1945_s26 }
  0x3a   : > { %1896 = vset.pattern.permute.xlu1 %v1946_v27 }
  0x3d   : > { %808 = vperm.xlu1 %1896, %v2019_v1  }
  0x41   : > { %1897 = vset.pattern.permute.xlu1 %v1947_v28 }
  0x42   : > { %857 = vperm.xlu1 %1897, %v2019_v1  }
  0x46   : > { %1898 = vset.pattern.permute.xlu1 %v1948_v29 }
  0x47   : > { %906 = vperm.xlu1 %1898, %v2019_v1  }
  0x4b   : > { %1899 = vset.pattern.permute.xlu1 %v1949_v30 }
  0x4c   : > { %955 = vperm.xlu1 %1899, %v2019_v1  }
  0x50   : > { %1900 = vset.pattern.permute.xlu1 %v1950_v31 }
  0x51   : > { %978 = vperm.xlu1 %1900, %v2019_v1  }
  0x55   : > { %1901 = vset.pattern.permute.xlu1 %v1951_v32 }
  0x56   : > { %1000 = vperm.xlu1 %1901, %v2019_v1  }
  0x5a   : > { %1902 = vset.pattern.permute.xlu1 %v1952_v33 }
  0x8e   : > { %v2076_v34 = vpop.permute.xlu0 %207  ;;  %v2078_v35 = vpop.permute.xlu1 %252 }
  0x92   : > { %v2093_v41 = vpop.permute.xlu0 %225 }
  0x93   : > { %v2095_v42 = vpop.permute.xlu1 %278 }
  0x97   : > { %v2110_v48 = vpop.permute.xlu0 %304 }
  0x98   : > { %v331_v51 = vpop.permute.xlu1 %330 }
  0x99   : > { %v363_v53 = vmul.f32 %v2100_v44, %v331_v51  ;;  %v362_v54 = vmul.f32 %v2103_v45, %v331_v51  ;;  %v364_v62 = vmul.f32 %v2118_v52, %v331_v51 }
  0x9b   : > { %370 = vrot.lane.b32.xlu0 %v363_v53, %s1953_s5  ;;  %368 = vrot.lane.b32.xlu1 %v362_v54, %s1953_s5 }
  0x9c   : > { %v383_v59 = vpop.permute.xlu0 %382 }
  0x9d   : > { %v432_v60 = vpop.permute.xlu1 %431  ;;  %v414_v61 = vmul.f32 %v2123_v55, %v383_v59  ;;  %v412_v4 = vmul.f32 %v2130_v57, %v383_v59  ;;  %v413_v15 = vmul.f32 %v2151_v5, %v383_v59 }
  0x9e   : > { %v461_v6 = vmul.f32 %v2137_v63, %v432_v60  ;;  %v463_v17 = vmul.f32 %v2155_v8, %v432_v60  ;;  %v462_v23 = vmul.f32 %v2174_v20, %v432_v60 }
  0x9f   : > { %422 = vrot.lane.b32.xlu0 %v414_v61, %s1953_s5  ;;  %372 = vrot.lane.b32.xlu1 %v364_v62, %s1953_s5 }
  0xa1   : > { %v549_v12 = vpop.permute.xlu0 %548 }
  0xa2   : > { %v481_v13 = vpop.permute.xlu1 %480 }
  0xa3   : > { %467 = vrot.lane.b32.xlu0 %v461_v6, %s1953_s5  ;;  %418 = vrot.lane.b32.xlu1 %v412_v4, %s1953_s5  ;;  %v510_v22 = vmul.f32 %v2171_v19, %v481_v13  ;;  %v512_v28 = vmul.f32 %v2183_v24, %v481_v13  ;;  %v511_v29 = vmul.f32 %v2186_v25, %v481_v13 }
  0xa6   : > { %v539_v21 = vpop.permute.xlu1 %538 }
  0xa7   : > { %471 = vrot.lane.b32.xlu0 %v463_v17, %s1953_s5  ;;  %420 = vrot.lane.b32.xlu1 %v413_v15, %s1953_s5  ;;  %v540_v43 = vrot.slane %v539_v21, 4 }
  0xa9   : > { %v542_v46 = vsel %vm541_vm0, %v540_v43, %v539_v21  ;;  %v546_v61 = vmul.f32 %v540_v43, %v2091_v40 }
  0xaa   : > { %v2188_v27 = vpop.permute.xlu1 %600  ;;  %v2209_v54 = vmul.f32 %v542_v46, %v2084_v37 }
  0xab   : > { %516 = vrot.lane.b32.xlu0 %v510_v22, %s1953_s5  ;;  %469 = vrot.lane.b32.xlu1 %v462_v23, %s1953_s5  ;;  %v564_v15 = vrot.slane %v546_v61, %v2029_v9 }
  0xac   : > { %v556_v60 = vrot.slane %v2209_v54, %v2029_v9  ;;  %v560_v11 = vrot.slane %v2209_v54, %v2081_v36  ;;  %v610_v7 = vrot.slane %v2209_v54, %v2115_v50  ;;  %v659_v46 = vrot.slane %v2209_v54, %v2142_v2 }
  0xad   : > { %v579_v23 = vrot.slane %v564_v15, %v2029_v9 }
  0xae   : > { %v571_v6 = vrot.slane %v556_v60, %v2029_v9  ;;  %v575_v17 = vrot.slane %v560_v11, %v2029_v9  ;;  %v625_v43 = vrot.slane %v610_v7, %v2032_v10  ;;  %v674_v60 = vrot.slane %v659_v46, %v2108_v47 }
  0xaf   : > { %v2194_v30 = vpop.permute.xlu1 %649  ;;  %520 = vrot.lane.b32.xlu0 %v512_v28, %s1953_s5  ;;  %518 = vrot.lane.b32.xlu1 %v511_v29, %s1953_s5  ;;  %v614_v28 = vrot.slane %v546_v61, %v2032_v10 }
  0xb0   : > { %v580_v16 = vmul.f32 %v571_v6, %v549_v12  ;;  %v581_v29 = vmul.f32 %v575_v17, %v549_v12  ;;  %v708_v6 = vrot.slane %v2209_v54, %v2162_v14  ;;  %v680_v11 = vmul.f32 %v674_v60, %v2194_v30 }
  0xb4   : > { %v2198_v31 = vpop.permute.xlu1 %698 }
  0xb8   : > { %v747_v32 = vpop.permute.xlu1 %746 }
  0xb9   : > { %v748_v21 = vrot.slane %v747_v32, 4 }
  0xbc   : > { %v2200_v33 = vpop.permute.xlu1 %808 }
  0xc1   : > { %v2202_v38 = vpop.permute.xlu1 %857 }
  0xc6   : > { %v2204_v39 = vpop.permute.xlu1 %906 }
  0xcb   : > { %v956_v49 = vpop.permute.xlu1 %955 }
  0xcc   : > { %v958_v51 = vmul.f32 %v956_v49, %v2103_v45  ;;  %v959_v53 = vmul.f32 %v956_v49, %v2100_v44  ;;  %v960_v58 = vmul.f32 %v956_v49, %v2118_v52  ;;  %v750_v49 = vsel %vm749_vm1, %v748_v21, %v747_v32 }
  0xce   : > { %964 = vrot.lane.b32.xlu0 %v958_v51, %s1954_s6  ;;  %966 = vrot.lane.b32.xlu1 %v959_v53, %s1954_s6  ;;  %v582_v51 = vmul.f32 %v579_v23, %v549_v12  ;;  %v629_v53 = vrot.slane %v614_v28, %v2032_v10  ;;  %v712_v12 = vrot.slane %v546_v61, %v2145_v3  ;;  %v757_v23 = vpop.permute.xlu0 %756 }
  0xd0   : > { %v979_v56 = vpop.permute.xlu1 %978  ;;  %v632_v32 = vmul.f32 %v629_v53, %v2188_v27 }
  0xd1   : > { %v982_v59 = vmul.f32 %v979_v56, %v2151_v5  ;;  %v981_v62 = vmul.f32 %v979_v56, %v2130_v57  ;;  %v983_v13 = vmul.f32 %v979_v56, %v2123_v55  ;;  %v663_v56 = vrot.slane %v546_v61, %v2108_v47 }
  0xd2   : > { %968 = vrot.lane.b32.xlu0 %v960_v58, %s1954_s6  ;;  %v2249_v58 = vmul.f32 %v750_v49, %v2084_v37 }
  0xd3   : > { %989 = vrot.lane.b32.xlu1 %v982_v59, %s1954_s6  ;;  %v631_v59 = vmul.f32 %v625_v43, %v2188_v27 }
  0xd4   : > { %v768_v61 = vrot.slane %v2249_v58, %v2081_v36 }
  0xd5   : > { %v2221_v0 = vpop.permute.xlu1 %1000 }
  0xd6   : > { %987 = vrot.lane.b32.xlu0 %v981_v62, %s1954_s6  ;;  %v1004_v4 = vmul.f32 %v2221_v0, %v2174_v20  ;;  %v1003_v22 = vmul.f32 %v2221_v0, %v2137_v63  ;;  %v754_v62 = vmul.f32 %v748_v21, %v2091_v40  ;;  %v727_v21 = vrot.slane %v712_v12, %v2145_v3 }
  0xd7   : > { %v783_v49 = vrot.slane %v768_v61, %v2029_v9 }
  0xd8   : > { %1011 = vrot.lane.b32.xlu1 %v1004_v4, %s1954_s6  ;;  %v678_v4 = vrot.slane %v663_v56, %v2108_v47  ;;  %v772_v17 = vrot.slane %v754_v62, %v2029_v9  ;;  %v730_v28 = vmul.f32 %v727_v21, %v2198_v31  ;;  %v822_v43 = vrot.slane %v754_v62, %v2032_v10 }
  0xd9   : > { %v789_v60 = vmul.f32 %v783_v49, %v757_v23  ;;  %v704_v49 = vrot.slane %v2209_v54, %v2145_v3 }
  0xda   : > { %991 = vrot.lane.b32.xlu0 %v983_v13, %s1954_s6  ;;  %v764_v13 = vrot.slane %v2249_v58, %v2029_v9  ;;  %v681_v15 = vmul.f32 %v678_v4, %v2194_v30  ;;  %v837_v56 = vrot.slane %v822_v43, %v2032_v10  ;;  %v867_v4 = vrot.slane %v2249_v58, %v2142_v2 }
  0xdc   : > { %586 = vrot.lane.b32.xlu1 %v580_v16, %s1955_s7  ;;  %v723_v16 = vrot.slane %v708_v6, %v2145_v3  ;;  %v840_v6 = vmul.f32 %v837_v56, %v2200_v33  ;;  %v719_v56 = vrot.slane %v704_v49, %v2145_v3 }
  0xde   : > { %1009 = vrot.lane.b32.xlu0 %v1003_v22, %s1954_s6  ;;  %v729_v7 = vmul.f32 %v723_v16, %v2198_v31  ;;  %v779_v22 = vrot.slane %v764_v13, %v2029_v9  ;;  %v882_v13 = vrot.slane %v867_v4, %v2108_v47  ;;  %v1957_v4 = vmov 20  }
  0xdf   : > { %1903 = vset.pattern.permute.xlu0 %v1957_v4 }
  0xe0   : > { %588 = vrot.lane.b32.xlu1 %v581_v29, %s1955_s7  ;;  %v787_v29 = vrot.slane %v772_v17, %v2029_v9  ;;  %v788_v46 = vmul.f32 %v779_v22, %v757_v23  ;;  %v916_v17 = vrot.slane %v2249_v58, %v2162_v14  ;;  %v888_v21 = vmul.f32 %v882_v13, %v2202_v38 }
  0xe2   : > { %590 = vrot.lane.b32.xlu0 %v582_v51, %s1955_s7  ;;  %v818_v51 = vrot.slane %v2249_v58, %v2115_v50  ;;  %v790_v53 = vmul.f32 %v787_v29, %v757_v23  ;;  %v931_v61 = vrot.slane %v916_v17, %v2145_v3 }
  0xe4   : > { %638 = vrot.lane.b32.xlu1 %v631_v59, %s1955_s7  ;;  %v871_v59 = vrot.slane %v754_v62, %v2108_v47  ;;  %v937_v29 = vmul.f32 %v931_v61, %v2204_v39 }
  0xe6   : > { %640 = vrot.lane.b32.xlu0 %v632_v32, %s1955_s7  ;;  %v833_v32 = vrot.slane %v818_v51, %v2032_v10 }
  0xe8   : > { %687 = vrot.lane.b32.xlu1 %v680_v11, %s1955_s7  ;;  %v886_v11 = vrot.slane %v871_v59, %v2108_v47  ;;  %v839_v12 = vmul.f32 %v833_v32, %v2200_v33  ;;  %v912_v32 = vrot.slane %v2249_v58, %v2145_v3 }
  0xea   : > { %689 = vrot.lane.b32.xlu0 %v681_v15, %s1955_s7  ;;  %v920_v15 = vrot.slane %v754_v62, %v2145_v3  ;;  %v889_v16 = vmul.f32 %v886_v11, %v2202_v38 }
  0xec   : > { %736 = vrot.lane.b32.xlu1 %v729_v7, %s1955_s7  ;;  %v606_v7 = vrot.slane %v2209_v54, %v2032_v10  ;;  %v935_v22 = vrot.slane %v920_v15, %v2145_v3 }
  0xee   : > { %738 = vrot.lane.b32.xlu0 %v730_v28, %s1955_s7  ;;  %v938_v62 = vmul.f32 %v935_v22, %v2204_v39  ;;  %v621_v23 = vrot.slane %v606_v7, %v2032_v10  ;;  %v655_v28 = vrot.slane %v2209_v54, %v2108_v47 }
  0xf0   : > { %794 = vrot.lane.b32.xlu1 %v788_v46, %s1956_s8  ;;  %v630_v43 = vmul.f32 %v621_v23, %v2188_v27  ;;  %v670_v46 = vrot.slane %v655_v28, %v2108_v47  ;;  %v728_v27 = vmul.f32 %v719_v56, %v2198_v31 }
  0xf2   : > { %798 = vrot.lane.b32.xlu0 %v790_v53, %s1956_s8  ;;  %v679_v51 = vmul.f32 %v670_v46, %v2194_v30  ;;  %v814_v53 = vrot.slane %v2249_v58, %v2032_v10 }
  0xf4   : > { %796 = vrot.lane.b32.xlu1 %v789_v60, %s1956_s8  ;;  %v829_v59 = vrot.slane %v814_v53, %v2032_v10  ;;  %v863_v60 = vrot.slane %v2249_v58, %v2108_v47 }
  0xf6   : > { %848 = vrot.lane.b32.xlu0 %v840_v6, %s1956_s8  ;;  %v838_v54 = vmul.f32 %v829_v59, %v2200_v33  ;;  %v878_v30 = vrot.slane %v863_v60, %v2108_v47  ;;  %v927_v6 = vrot.slane %v912_v32, %v2145_v3  ;;  %v1005_v33 = vmul.f32 %v2221_v0, %v2155_v8 }
  0xf8   : > { %846 = vrot.lane.b32.xlu1 %v839_v12, %s1956_s8  ;;  %v887_v31 = vmul.f32 %v878_v30, %v2202_v38  ;;  %v936_v11 = vmul.f32 %v927_v6, %v2204_v39  ;;  %v2356_v39 = vmul.f32 %v2055_v26, %v2084_v37 }
  0xfa   : > { %897 = vrot.lane.b32.xlu0 %v889_v16, %s1956_s8  ;;  %v236_v0 = vrot.slane %v2356_v39, %v2081_v36  ;;  %v262_v61 = vrot.slane %v2356_v39, %v2115_v50  ;;  %v288_v46 = vrot.slane %v2356_v39, %v2142_v2  ;;  %v314_v56 = vrot.slane %v2356_v39, %v2162_v14 }
  0xfc   : > { %895 = vrot.lane.b32.xlu1 %v888_v21, %s1956_s8  ;;  %v298_v59 = vrot.slane %v288_v46, %v2108_v47  ;;  %v324_v32 = vrot.slane %v314_v56, %v2145_v3 }
  0xfe   : > { %946 = vrot.lane.b32.xlu0 %v938_v62, %s1956_s8  ;;  %v246_v62 = vrot.slane %v236_v0, %v2029_v9  ;;  %v300_v4 = vmul.f32 %v298_v59, %v2095_v42 }
 0x100   : > { %944 = vrot.lane.b32.xlu1 %v937_v29, %s1956_s8  ;;  %v248_v29 = vmul.f32 %v246_v62, %v2093_v41 }
 0x102   : > { %636 = vrot.lane.b32.xlu0 %v630_v43, %s1955_s7  ;;  %v272_v43 = vrot.slane %v262_v61, %v2032_v10  ;;  %v250_v53 = vadd.f32 %v248_v29, %v2076_v34 }
 0x104   : > { %1022 = vperm.xlu1 %1902, %v2019_v1  }
 0x106   : > { %685 = vrot.lane.b32.xlu0 %v679_v51, %s1955_s7 }
 0x10a   : > { %734 = vrot.lane.b32.xlu0 %v728_v27, %s1955_s7  ;;  %v274_v27 = vmul.f32 %v272_v43, %v2078_v35 }
 0x10c   : > { %v276_v30 = vadd.f32 %v274_v27, %v250_v53  ;;  %v232_v27 = vrot.slane %v2356_v39, %v2029_v9 }
 0x10d   : > { %v2344_v12 = vpop.permute.xlu0 %370  ;;  %v2346_v58 = vpop.permute.xlu1 %368 }
 0x10e   : > { %844 = vrot.lane.b32.xlu0 %v838_v54, %s1956_s8  ;;  %v302_v6 = vadd.f32 %v300_v4, %v276_v30 }
 0x111   : > { %v423_v13 = vpop.permute.xlu0 %422  ;;  %v373_v15 = vpop.permute.xlu1 %372 }
 0x112   : > { %893 = vrot.lane.b32.xlu0 %v887_v31, %s1956_s8  ;;  %v376_v62 = vsel %vm374_vm2, %v2344_v12, %v373_v15 }
 0x115   : > { %v2348_v38 = vpop.permute.xlu0 %467  ;;  %v2350_v16 = vpop.permute.xlu1 %418 }
 0x116   : > { %942 = vrot.lane.b32.xlu0 %v936_v11, %s1956_s8  ;;  %v326_v11 = vmul.f32 %v324_v32, %v2110_v48 }
 0x118   : > { %v328_v61 = vadd.f32 %v326_v11, %v302_v6  ;;  %v242_v11 = vrot.slane %v232_v27, %v2029_v9 }
 0x119   : > { %v472_v17 = vpop.permute.xlu0 %471  ;;  %v2352_v7 = vpop.permute.xlu1 %420 }
 0x11a   : > { %1013 = vrot.lane.b32.xlu0 %v1005_v33, %s1954_s6  ;;  %v425_v43 = vsel %vm374_vm2, %v2352_v7, %v423_v13  ;;  %v380_v46 = vadd.f32 %v376_v62, %v328_v61 }
 0x11c   : > { %v429_v59 = vadd.f32 %v425_v43, %v380_v46  ;;  %v247_v46 = vmul.f32 %v242_v11, %v2093_v41 }
 0x11d   : > { %v2360_v21 = vpop.permute.xlu0 %516  ;;  %v2362_v22 = vpop.permute.xlu1 %469 }
 0x11e   : > { %v474_v56 = vsel %vm374_vm2, %v2362_v22, %v472_v17  ;;  %v258_v17 = vrot.slane %v2356_v39, %v2032_v10 }
 0x11f   : > { %v478_v4 = vadd.f32 %v474_v56, %v429_v59  ;;  %v284_v56 = vrot.slane %v2356_v39, %v2108_v47 }
 0x121   : > { %v521_v23 = vpop.permute.xlu0 %520  ;;  %v2367_v28 = vpop.permute.xlu1 %518  ;;  %v294_v41 = vrot.slane %v284_v56, %v2108_v47 }
 0x122   : > { %v523_v15 = vsel %vm374_vm2, %v2367_v28, %v521_v23 }
 0x123   : > { %v527_v62 = vadd.f32 %v523_v15, %v478_v4  ;;  %v310_v15 = vrot.slane %v2356_v39, %v2145_v3 }
 0x140   : > { %v2373_v49 = vpop.permute.xlu0 %964  ;;  %v2375_v51 = vpop.permute.xlu1 %966 }
 0x144   : > { %v2382_v60 = vpop.permute.xlu0 %968 }
 0x145   : > { %v2384_v54 = vpop.permute.xlu1 %989 }
 0x148   : > { %v2388_v31 = vpop.permute.xlu0 %987 }
 0x14a   : > { %v2391_v33 = vpop.permute.xlu1 %1011 }
 0x14c   : > { %v2393_v0 = vpop.permute.xlu0 %991 }
 0x14e   : > { %v587_v29 = vpop.permute.xlu1 %586 }
 0x150   : > { %v2399_v53 = vpop.permute.xlu0 %1009 }
 0x152   : > { %v589_v30 = vpop.permute.xlu1 %588 }
 0x153   : > { %v593_v32 = vsel %vm592_vm3, %v587_v29, %v589_v30  ;;  %v268_v29 = vrot.slane %v258_v17, %v2032_v10 }
 0x154   : > { %v591_v6 = vpop.permute.xlu0 %590 }
 0x155   : > { %v594_v13 = vsel %vm592_vm3, %v589_v30, %v591_v6  ;;  %v249_v30 = vadd.f32 %v247_v46, %v2076_v34 }
 0x156   : > { %v639_v61 = vpop.permute.xlu1 %638  ;;  %v598_v8 = vadd.f32 %v594_v13, %v527_v62  ;;  %v320_v62 = vrot.slane %v310_v15, %v2145_v3 }
 0x158   : > { %v641_v20 = vpop.permute.xlu0 %640  ;;  %v325_v39 = vmul.f32 %v320_v62, %v2110_v48 }
 0x159   : > { %v643_v43 = vsel %vm592_vm3, %v639_v61, %v641_v20  ;;  %v273_v20 = vmul.f32 %v268_v29, %v2078_v35 }
 0x15a   : > { %v647_v23 = vadd.f32 %v643_v43, %v598_v8  ;;  %v688_v63 = vpop.permute.xlu1 %687 }
 0x15b   : > { %v275_v11 = vadd.f32 %v273_v20, %v249_v30  ;;  %v375_v30 = vsel %vm374_vm2, %v2346_v58, %v2344_v12  ;;  %v522_v12 = vsel %vm374_vm2, %v2360_v21, %v2367_v28 }
 0x15c   : > { %v690_v59 = vpop.permute.xlu0 %689 }
 0x15d   : > { %v692_v27 = vsel %vm592_vm3, %v688_v63, %v690_v59  ;;  %v299_v59 = vmul.f32 %v294_v41, %v2095_v42  ;;  %v424_v42 = vsel %vm374_vm2, %v2350_v16, %v2352_v7 }
 0x15e   : > { %v696_v4 = vadd.f32 %v692_v27, %v647_v23  ;;  %v737_v6 = vpop.permute.xlu1 %736 }
 0x15f   : > { %v301_v46 = vadd.f32 %v299_v59, %v275_v11 }
 0x160   : > { %v739_v8 = vpop.permute.xlu0 %738 }
 0x161   : > { %v741_v13 = vsel %vm592_vm3, %v737_v6, %v739_v8  ;;  %v327_v15 = vadd.f32 %v325_v39, %v301_v46 }
 0x162   : > { %v745_v17 = vadd.f32 %v741_v13, %v696_v4  ;;  %v795_v43 = vpop.permute.xlu1 %794  ;;  %v473_v13 = vsel %vm374_vm2, %v2348_v38, %v2362_v22  ;;  %v972_v38 = vsel %vm970_vm5, %v2375_v51, %v2382_v60 }
 0x163   : > { %v379_v48 = vadd.f32 %v375_v30, %v327_v15 }
 0x164   : > { %v799_v34 = vpop.permute.xlu0 %798 }
 0x165   : > { %v428_v11 = vadd.f32 %v424_v42, %v379_v48 }
 0x166   : > { %v797_v23 = vpop.permute.xlu1 %796 }
 0x167   : > { %v801_v35 = vsel %vm800_vm4, %v795_v43, %v797_v23  ;;  %v802_v29 = vsel %vm800_vm4, %v797_v23, %v799_v34 }
 0x168   : > { %v806_v56 = vadd.f32 %v802_v29, %v745_v17  ;;  %v849_v27 = vpop.permute.xlu0 %848  ;;  %v477_v17 = vadd.f32 %v473_v13, %v428_v11  ;;  %v994_v29 = vsel %vm970_vm5, %v2384_v54, %v2393_v0 }
 0x16a   : > { %v847_v4 = vpop.permute.xlu1 %846  ;;  %v526_v7 = vadd.f32 %v522_v12, %v477_v17 }
 0x16b   : > { %v851_v20 = vsel %vm800_vm4, %v847_v4, %v849_v27 }
 0x16c   : > { %v855_v41 = vadd.f32 %v851_v20, %v806_v56  ;;  %v898_v8 = vpop.permute.xlu0 %897  ;;  %v597_v46 = vadd.f32 %v593_v32, %v526_v7  ;;  %v1015_v7 = vsel %vm970_vm5, %v2399_v53, %v2391_v33  ;;  %v1966_v53 = vmov 35  }
 0x16e   : > { %v896_v62 = vpop.permute.xlu1 %895 }
 0x16f   : > { %v900_v58 = vsel %vm800_vm4, %v896_v62, %v898_v8 }
 0x170   : > { %v904_v43 = vadd.f32 %v900_v58, %v855_v41  ;;  %v947_v16 = vpop.permute.xlu0 %946 }
 0x172   : > { %v945_v59 = vpop.permute.xlu1 %944 }
 0x173   : > { %v949_v34 = vsel %vm800_vm4, %v945_v59, %v947_v16 }
 0x174   : > { %v953_v39 = vadd.f32 %v949_v34, %v904_v43  ;;  %v637_v23 = vpop.permute.xlu0 %636  ;;  %v993_v43 = vsel %vm970_vm5, %v2388_v31, %v2384_v54  ;;  %v1959_v34 = vmov 21   ;;  %v1964_v54 = vmov 31  }
 0x175   : > { %v642_v22 = vsel %vm592_vm3, %v637_v23, %v639_v61  ;;  %v1965_v31 = vmov 33  }
 0x176   : > { %v976_v21 = vadd.f32 %v972_v38, %v953_v39  ;;  %v646_v28 = vadd.f32 %v642_v22, %v597_v46  ;;  %v1960_v46 = vmov 22  }
 0x177   : > { %1905 = vset.pattern.permute.xlu1 %v1960_v46  ;;  %v1976_v46 = vmov 34  }
 0x178   : > { %v686_v56 = vpop.permute.xlu0 %685  ;;  %v998_v27 = vadd.f32 %v994_v29, %v976_v21 }
 0x179   : > { %v691_v30 = vsel %vm592_vm3, %v686_v56, %v688_v63 }
 0x17a   : > { %v695_v15 = vadd.f32 %v691_v30, %v646_v28 }
 0x17c   : > { %v735_v32 = vpop.permute.xlu0 %734 }
 0x17d   : > { %v740_v42 = vsel %vm592_vm3, %v735_v32, %v737_v6 }
 0x17e   : > { %v744_v20 = vadd.f32 %v740_v42, %v695_v15 }
 0x180   : > { %v845_v48 = vpop.permute.xlu0 %844  ;;  %v805_v41 = vadd.f32 %v801_v35, %v744_v20 }
 0x181   : > { %v850_v60 = vsel %vm800_vm4, %v845_v48, %v847_v4 }
 0x182   : > { %v854_v61 = vadd.f32 %v850_v60, %v805_v41 }
 0x183   : > { %v1023_v8 = vpop.permute.xlu1 %1022 }
 0x184   : > { %v1025_v13 = vmul.f32 %v1023_v8, %v2171_v19  ;;  %v1026_v11 = vmul.f32 %v1023_v8, %v2186_v25  ;;  %v894_v0 = vpop.permute.xlu0 %893  ;;  %v1027_v63 = vmul.f32 %v1023_v8, %v2183_v24 }
 0x185   : > { %v899_v12 = vsel %vm800_vm4, %v894_v0, %v896_v62  ;;  %v971_v62 = vsel %vm970_vm5, %v2373_v49, %v2375_v51  ;;  %v1962_v49 = vmov 25   ;;  %v1963_v51 = vmov 28  }
 0x186   : > { %v903_v58 = vadd.f32 %v899_v12, %v854_v61  ;;  %1033 = vrot.lane.b32.xlu1 %v1026_v11, %s1954_s6  ;;  %1031 = vrot.lane.b32.xlu0 %v1025_v13, %s1954_s6 }
 0x188   : > { %v943_v6 = vpop.permute.xlu0 %942 }
 0x189   : > { %v948_v35 = vsel %vm800_vm4, %v943_v6, %v945_v59 }
 0x18a   : > { %v952_v4 = vadd.f32 %v948_v35, %v903_v58  ;;  %1035 = vrot.lane.b32.xlu0 %v1027_v63, %s1954_s6  ;;  %1043 = vrot.lane.b32.xlu1 %v2043_v18, %s1958_s9 }
 0x18c   : > { %v975_v17 = vadd.f32 %v971_v62, %v952_v4  ;;  %v1968_v4 = vmov 23   ;;  %v1969_v62 = vmov 24  }
 0x18e   : > { %1053 = vperm.xlu0 %1903, %v2019_v1   ;;  %v997_v16 = vadd.f32 %v993_v43, %v975_v17  ;;  %v1970_v17 = vmov 26   ;;  %v1971_v43 = vmov 27  }
 0x190   : > { %v1019_v59 = vadd.f32 %v1015_v7, %v997_v16  ;;  %v1972_v16 = vmov 29   ;;  %v1973_v7 = vmov 30  }
 0x192   : > { %1904 = vset.pattern.permute.xlu0 %v1959_v34  ;;  %v1920_v34 = vld [vmem:[%s2732_s1] sm:$0xff] }
 0x193   : > { %1105 = vperm.xlu0 %1904, %v2019_v1  }
 0x197   : > { %1251 = vrot.lane.b32.xlu0 %v2055_v26, %s1961_s10  ;;  %v1014_v26 = vpop.permute.xlu0 %1013 }
 0x198   : > { %1908 = vset.pattern.permute.xlu0 %v1962_v49  ;;  %v1016_v38 = vsel %vm970_vm5, %v2391_v33, %v1014_v26 }
 0x199   : > { %v1020_v28 = vadd.f32 %v1016_v38, %v998_v27 }
 0x19b   : > { %1313 = vperm.xlu0 %1908, %v2019_v1  }
 0x19f   : > { %1911 = vset.pattern.permute.xlu0 %v1963_v51 }
 0x1a0   : > { %1460 = vperm.xlu0 %1911, %v2019_v1  }
 0x1a4   : > { %1914 = vset.pattern.permute.xlu0 %v1964_v54 }
 0x1a5   : > { %1527 = vperm.xlu0 %1914, %v2019_v1  }
 0x1a9   : > { %1916 = vset.pattern.permute.xlu0 %v1965_v31 }
 0x1aa   : > { %1610 = vperm.xlu0 %1916, %v2019_v1  }
 0x1ae   : > { %1919 = vset.pattern.permute.xlu0 %v1966_v53 }
 0x1f8   : > { %v1034_v39 = vpop.permute.xlu1 %1033  ;;  %v1032_v23 = vpop.permute.xlu0 %1031 }
 0x1f9   : > { %v1037_v22 = vsel %vm970_vm5, %v1032_v23, %v1034_v39 }
 0x1fa   : > { %v2483_v21 = vadd.f32 %v1037_v22, %v1019_v59  ;;  %v1975_v59 = vmov 32  }
 0x1fc   : > { %v1036_v29 = vpop.permute.xlu0 %1035  ;;  %v1044_v56 = vpop.permute.xlu1 %1043 }
 0x1fd   : > { %v1038_v30 = vsel %vm970_vm5, %v1034_v39, %v1036_v29  ;;  %v1045_v15 = vrot.slane %v1044_v56, 4 }
 0x1fe   : > { %v2486_v32 = vadd.f32 %v1038_v30, %v1020_v28 }
 0x1ff   : > { %v1047_v42 = vsel %vm1046_vm6, %v1045_v15, %v1044_v56  ;;  %v2489_v20 = vmul.f32 %v1045_v15, %v2091_v40 }
 0x200   : > { %v2492_v48 = vmul.f32 %v1047_v42, %v2084_v37 }
 0x201   : > { %v1069_v33 = vrot.slane %v2489_v20, %v2029_v9 }
 0x202   : > { %v1061_v27 = vrot.slane %v2492_v48, %v2029_v9  ;;  %v1065_v60 = vrot.slane %v2492_v48, %v2081_v36  ;;  %v1115_v13 = vrot.slane %v2492_v48, %v2115_v50  ;;  %v1111_v49 = vrot.slane %v2492_v48, %v2032_v10 }
 0x203   : > { %v1084_v41 = vrot.slane %v1069_v33, %v2029_v9  ;;  %v1160_v33 = vrot.slane %v2492_v48, %v2108_v47 }
 0x204   : > { %v1076_v61 = vrot.slane %v1061_v27, %v2029_v9  ;;  %v1080_v12 = vrot.slane %v1065_v60, %v2029_v9  ;;  %v1130_v58 = vrot.slane %v1115_v13, %v2032_v10  ;;  %v1164_v27 = vrot.slane %v2492_v48, %v2142_v2 }
 0x205   : > { %v1168_v60 = vrot.slane %v2489_v20, %v2108_v47 }
 0x20d   : > { %v1054_v8 = vpop.permute.xlu0 %1053 }
 0x20e   : > { %v1085_v11 = vmul.f32 %v1076_v61, %v1054_v8  ;;  %v1087_v0 = vmul.f32 %v1084_v41, %v1054_v8  ;;  %v1086_v63 = vmul.f32 %v1080_v12, %v1054_v8  ;;  %v1175_v61 = vrot.slane %v1160_v33, %v2108_v47 }
 0x20f   : > { %v1179_v8 = vrot.slane %v1164_v27, %v2108_v47 }
 0x210   : > { %1095 = vrot.lane.b32.xlu0 %v1087_v0, %s1967_s11  ;;  %1091 = vrot.lane.b32.xlu1 %v1085_v11, %s1967_s11 }
 0x212   : > { %v1106_v6 = vpop.permute.xlu0 %1105 }
 0x213   : > { %v1136_v35 = vmul.f32 %v1130_v58, %v1106_v6  ;;  %v1183_v58 = vrot.slane %v1168_v60, %v2108_v47 }
 0x214   : > { %1093 = vrot.lane.b32.xlu1 %v1086_v63, %s1967_s11  ;;  %v1213_v63 = vrot.slane %v2492_v48, %v2162_v14 }
 0x215   : > { %1143 = vrot.lane.b32.xlu0 %v1136_v35, %s1967_s11 }
 0x216   : > { %v1252_v26 = vpop.permute.xlu0 %1251 }
 0x217   : > { %v1253_v41 = vrot.slane %v1252_v26, 4 }
 0x218   : > { %1154 = vperm.xlu1 %1905, %v2019_v1  }
 0x21a   : > { %v2530_v39 = vpop.permute.xlu0 %1313 }
 0x21c   : > { %1906 = vset.pattern.permute.xlu1 %v1968_v4 }
 0x21d   : > { %1203 = vperm.xlu1 %1906, %v2019_v1  }
 0x21f   : > { %v2532_v23 = vpop.permute.xlu0 %1460 }
 0x221   : > { %1907 = vset.pattern.permute.xlu1 %v1969_v62 }
 0x222   : > { %1261 = vperm.xlu1 %1907, %v2019_v1  }
 0x226   : > { %1909 = vset.pattern.permute.xlu1 %v1970_v17 }
 0x227   : > { %1362 = vperm.xlu1 %1909, %v2019_v1  }
 0x22b   : > { %1910 = vset.pattern.permute.xlu1 %v1971_v43  ;;  %v1228_v43 = vrot.slane %v1213_v63, %v2145_v3 }
 0x22c   : > { %1411 = vperm.xlu1 %1910, %v2019_v1  }
 0x230   : > { %1912 = vset.pattern.permute.xlu1 %v1972_v16 }
 0x231   : > { %1483 = vperm.xlu1 %1912, %v2019_v1  }
 0x235   : > { %1913 = vset.pattern.permute.xlu1 %v1973_v7 }
 0x236   : > { %1505 = vperm.xlu1 %1913, %v2019_v1   ;;  %v1119_v1 = vrot.slane %v2489_v20, %v2032_v10 }
 0x238   : > { %v1134_v54 = vrot.slane %v1119_v1, %v2032_v10 }
 0x23a   : > { %1548 = vrot.lane.b32.xlu1 %v2043_v18, %s1974_s12  ;;  %v1126_v18 = vrot.slane %v1111_v49, %v2032_v10  ;;  %v1137_v31 = vmul.f32 %v1134_v54, %v1106_v6 }
 0x23b   : > { %1915 = vset.pattern.permute.xlu1 %v1975_v59 }
 0x23c   : > { %v1135_v51 = vmul.f32 %v1126_v18, %v1106_v6  ;;  %v1217_v6 = vrot.slane %v2489_v20, %v2145_v3 }
 0x23e   : > { %1558 = vperm.xlu1 %1915, %v1920_v34   ;;  %v1232_v7 = vrot.slane %v1217_v6, %v2145_v3 }
 0x242   : > { %1917 = vset.pattern.permute.xlu1 %v1976_v46 }
 0x243   : > { %1659 = vperm.xlu1 %1917, %v1920_v34  }
 0x247   : > { %1918 = vset.pattern.permute.xlu1 %v1966_v53  ;;  %v2534_v53 = vpop.permute.xlu0 %1527 }
 0x248   : > { %1708 = vperm.xlu1 %1918, %v1920_v34  }
 0x24b   : > { %v2536_v38 = vpop.permute.xlu0 %1610 }
 0x24c   : > { %1141 = vrot.lane.b32.xlu1 %v1135_v51, %s1967_s11 }
 0x250   : > { %1145 = vrot.lane.b32.xlu1 %v1137_v31, %s1967_s11 }
 0x282   : > { %v1092_v22 = vpop.permute.xlu1 %1091  ;;  %v1096_v28 = vpop.permute.xlu0 %1095 }
 0x286   : > { %v1094_v29 = vpop.permute.xlu1 %1093 }
 0x287   : > { %v1098_v56 = vsel %vm1097_vm7, %v1092_v22, %v1094_v29  ;;  %v1099_v30 = vsel %vm1097_vm7, %v1094_v29, %v1096_v28 }
 0x288   : > { %v2541_v15 = vadd.f32 %v1098_v56, %v2483_v21  ;;  %v2544_v42 = vadd.f32 %v1099_v30, %v2486_v32  ;;  %v1255_v21 = vsel %vm1254_vm8, %v1253_v41, %v1252_v26  ;;  %v1209_v32 = vrot.slane %v2492_v48, %v2145_v3 }
 0x289   : > { %v2557_v12 = vmul.f32 %v1255_v21, %v2084_v37  ;;  %v1259_v37 = vmul.f32 %v1253_v41, %v2091_v40 }
 0x28a   : > { %v1224_v35 = vrot.slane %v1209_v32, %v2145_v3 }
 0x28b   : > { %v1269_v16 = vrot.slane %v2557_v12, %v2029_v9  ;;  %v1273_v20 = vrot.slane %v2557_v12, %v2081_v36  ;;  %v1319_v59 = vrot.slane %v2557_v12, %v2032_v10  ;;  %v1277_v46 = vrot.slane %v1259_v37, %v2029_v9 }
 0x28c   : > { %v1323_v18 = vrot.slane %v2557_v12, %v2115_v50  ;;  %v1327_v54 = vrot.slane %v1259_v37, %v2032_v10  ;;  %v1368_v27 = vrot.slane %v2557_v12, %v2108_v47  ;;  %v1372_v41 = vrot.slane %v2557_v12, %v2142_v2 }
 0x28d   : > { %v1284_v49 = vrot.slane %v1269_v16, %v2029_v9  ;;  %v1288_v1 = vrot.slane %v1273_v20, %v2029_v9  ;;  %v1334_v31 = vrot.slane %v1319_v59, %v2032_v10  ;;  %v1292_v22 = vrot.slane %v1277_v46, %v2029_v9 }
 0x28e   : > { %v1338_v28 = vrot.slane %v1323_v18, %v2032_v10  ;;  %v1342_v56 = vrot.slane %v1327_v54, %v2032_v10  ;;  %v1383_v21 = vrot.slane %v1368_v27, %v2108_v47  ;;  %v1417_v32 = vrot.slane %v2557_v12, %v2145_v3  ;;  %v2743_v18 = vld [vmem:[#allocation4_spill] sm:$0xff] }
 0x28f   : > { %v1343_v30 = vmul.f32 %v1334_v31, %v2530_v39  ;;  %v1425_v6 = vrot.slane %v1259_v37, %v2145_v3  ;;  %v1530_v54 = vmul.f32 %v2534_v53, %v2171_v19  ;;  %v1922_v31 = vld [vmem:[%s2074_s30 + $0x8] sm:$0xf] }
 0x290   : > { %v1344_v60 = vmul.f32 %v1338_v28, %v2530_v39 }
 0x291   : > { %v1440_v16 = vrot.slane %v1425_v6, %v2145_v3 }
 0x297   : > { %v1155_v13 = vpop.permute.xlu1 %1154 }
 0x298   : > { %v1184_v11 = vmul.f32 %v1175_v61, %v1155_v13  ;;  %v1185_v0 = vmul.f32 %v1179_v8, %v1155_v13  ;;  %v1186_v4 = vmul.f32 %v1183_v58, %v1155_v13  ;;  %v1345_v61 = vmul.f32 %v1342_v56, %v2530_v39 }
 0x299   : > { %v1376_v8 = vrot.slane %v1259_v37, %v2108_v47  ;;  %v1387_v13 = vrot.slane %v1372_v41, %v2108_v47  ;;  %v1421_v39 = vrot.slane %v2557_v12, %v2162_v14  ;;  %v1463_v37 = vmul.f32 %v2532_v23, %v2103_v45 }
 0x29a   : > { %1190 = vrot.lane.b32.xlu0 %v1184_v11, %s1967_s11  ;;  %1192 = vrot.lane.b32.xlu1 %v1185_v0, %s1967_s11 }
 0x29b   : > { %v1391_v63 = vrot.slane %v1376_v8, %v2108_v47 }
 0x29c   : > { %v1204_v62 = vpop.permute.xlu1 %1203 }
 0x29d   : > { %v1233_v17 = vmul.f32 %v1224_v35, %v1204_v62  ;;  %v1234_v48 = vmul.f32 %v1228_v43, %v1204_v62  ;;  %v1235_v34 = vmul.f32 %v1232_v7, %v1204_v62  ;;  %v1432_v35 = vrot.slane %v1417_v32, %v2145_v3 }
 0x29e   : > { %1194 = vrot.lane.b32.xlu0 %v1186_v4, %s1967_s11  ;;  %v1436_v43 = vrot.slane %v1421_v39, %v2145_v3 }
 0x29f   : > { %1239 = vrot.lane.b32.xlu1 %v1233_v17, %s1967_s11 }
 0x2a1   : > { %v1262_v40 = vpop.permute.xlu1 %1261 }
 0x2a2   : > { %1241 = vrot.lane.b32.xlu0 %v1234_v48, %s1967_s11  ;;  %v1293_v51 = vmul.f32 %v1284_v49, %v1262_v40  ;;  %v1294_v26 = vmul.f32 %v1288_v1, %v1262_v40  ;;  %v1295_v29 = vmul.f32 %v1292_v22, %v1262_v40  ;;  %v1464_v48 = vmul.f32 %v2532_v23, %v2100_v44  ;;  %v2742_v1 = vld [vmem:[#allocation2_spill] sm:$0xff] }
 0x2a3   : > { %1243 = vrot.lane.b32.xlu1 %v1235_v34, %s1967_s11  ;;  %v1465_v34 = vmul.f32 %v2532_v23, %v2118_v52  ;;  %v1921_v52 = vld [vmem:[%s2074_s30] sm:$0xff] }
 0x2a6   : > { %1299 = vrot.lane.b32.xlu0 %v1293_v51, %s1977_s17  ;;  %v1363_v33 = vpop.permute.xlu1 %1362 }
 0x2a7   : > { %1301 = vrot.lane.b32.xlu1 %v1294_v26, %s1977_s17  ;;  %v1392_v11 = vmul.f32 %v1383_v21, %v1363_v33  ;;  %v1393_v58 = vmul.f32 %v1387_v13, %v1363_v33  ;;  %v1394_v4 = vmul.f32 %v1391_v63, %v1363_v33 }
 0x2aa   : > { %1303 = vrot.lane.b32.xlu0 %v1295_v29, %s1977_s17  ;;  %v1531_v29 = vmul.f32 %v2534_v53, %v2186_v25 }
 0x2ab   : > { %1349 = vrot.lane.b32.xlu1 %v1343_v30, %s1977_s17  ;;  %v1412_v0 = vpop.permute.xlu1 %1411  ;;  %v1532_v30 = vmul.f32 %v2534_v53, %v2183_v24 }
 0x2ac   : > { %v1441_v17 = vmul.f32 %v1432_v35, %v1412_v0  ;;  %v1442_v12 = vmul.f32 %v1436_v43, %v1412_v0  ;;  %v1443_v7 = vmul.f32 %v1440_v16, %v1412_v0 }
 0x2ae   : > { %1351 = vrot.lane.b32.xlu0 %v1344_v60, %s1977_s17 }
 0x2af   : > { %1353 = vrot.lane.b32.xlu1 %v1345_v61, %s1977_s17 }
 0x2b0   : > { %v1484_v62 = vpop.permute.xlu1 %1483 }
 0x2b1   : > { %v1486_v59 = vmul.f32 %v1484_v62, %v2130_v57  ;;  %v1487_v44 = vmul.f32 %v1484_v62, %v2151_v5  ;;  %v1488_v46 = vmul.f32 %v1484_v62, %v2123_v55  ;;  %v2744_v5 = vld [vmem:[#allocation3_spill] sm:$0xff] }
 0x2b2   : > { %1398 = vrot.lane.b32.xlu0 %v1392_v11, %s1977_s17 }
 0x2b3   : > { %1400 = vrot.lane.b32.xlu1 %v1393_v58, %s1977_s17 }
 0x2b5   : > { %v1506_v20 = vpop.permute.xlu1 %1505 }
 0x2b6   : > { %1402 = vrot.lane.b32.xlu0 %v1394_v4, %s1977_s17  ;;  %v1508_v57 = vmul.f32 %v1506_v20, %v2742_v1  ;;  %v1509_v51 = vmul.f32 %v1506_v20, %v2743_v18  ;;  %v1510_v55 = vmul.f32 %v1506_v20, %v2744_v5 }
 0x2b7   : > { %1447 = vrot.lane.b32.xlu1 %v1441_v17, %s1977_s17 }
 0x2b9   : > { %v1549_v45 = vpop.permute.xlu1 %1548 }
 0x2ba   : > { %1449 = vrot.lane.b32.xlu0 %v1442_v12, %s1977_s17  ;;  %v1550_v40 = vrot.slane %v1549_v45, 4 }
 0x2bb   : > { %1451 = vrot.lane.b32.xlu1 %v1443_v7, %s1977_s17 }
 0x2bc   : > { %v1552_v49 = vsel %vm1551_vm9, %v1550_v40, %v1549_v45  ;;  %v1556_v26 = vmul.f32 %v1922_v31, %v1550_v40 }
 0x2bd   : > { %v1555_v23 = vmul.f32 %v1921_v52, %v1552_v49 }
 0x2be   : > { %1469 = vrot.lane.b32.xlu0 %v1463_v37, %s1978_s18  ;;  %v1574_v56 = vrot.slane %v1556_v26, %v2029_v9  ;;  %v1624_v21 = vrot.slane %v1556_v26, %v2032_v10  ;;  %v1673_v11 = vrot.slane %v1556_v26, %v2108_v47  ;;  %v1722_v17 = vrot.slane %v1556_v26, %v2145_v3 }
 0x2bf   : > { %1471 = vrot.lane.b32.xlu1 %v1464_v48, %s1978_s18  ;;  %v1566_v22 = vrot.slane %v1555_v23, %v2029_v9  ;;  %v1570_v28 = vrot.slane %v1555_v23, %v2081_v36  ;;  %v1616_v27 = vrot.slane %v1555_v23, %v2032_v10  ;;  %v1559_v36 = vpop.permute.xlu1 %1558  ;;  %v1620_v25 = vrot.slane %v1555_v23, %v2115_v50  ;;  %v1144_v48 = vpop.permute.xlu0 %1143 }
 0x2c0   : > { %v1589_v41 = vrot.slane %v1574_v56, %v2029_v9  ;;  %v1665_v53 = vrot.slane %v1555_v23, %v2108_v47  ;;  %v1639_v50 = vrot.slane %v1624_v21, %v2032_v10  ;;  %v1714_v39 = vrot.slane %v1555_v23, %v2145_v3 }
 0x2c1   : > { %v1581_v19 = vrot.slane %v1566_v22, %v2029_v9  ;;  %v1585_v33 = vrot.slane %v1570_v28, %v2029_v9  ;;  %v1631_v8 = vrot.slane %v1616_v27, %v2032_v10  ;;  %v1635_v13 = vrot.slane %v1620_v25, %v2032_v10 }
 0x2c2   : > { %1473 = vrot.lane.b32.xlu0 %v1465_v34, %s1978_s18  ;;  %v1592_v24 = vmul.f32 %v1589_v41, %v1559_v36  ;;  %v1669_v9 = vrot.slane %v1555_v23, %v2142_v2  ;;  %v1680_v0 = vrot.slane %v1665_v53, %v2108_v47  ;;  %v1642_v2 = vmul.f32 %v1639_v50, %v2536_v38 }
 0x2c3   : > { %1492 = vrot.lane.b32.xlu1 %v1486_v59, %s1978_s18  ;;  %v1590_v60 = vmul.f32 %v1581_v19, %v1559_v36  ;;  %v1591_v61 = vmul.f32 %v1585_v33, %v1559_v36  ;;  %v1640_v32 = vmul.f32 %v1631_v8, %v2536_v38  ;;  %v1641_v58 = vmul.f32 %v1635_v13, %v2536_v38  ;;  %v1660_v6 = vpop.permute.xlu1 %1659 }
 0x2c4   : > { %v1684_v63 = vrot.slane %v1669_v9, %v2108_v47  ;;  %v1688_v10 = vrot.slane %v1673_v11, %v2108_v47  ;;  %v1689_v35 = vmul.f32 %v1680_v0, %v1660_v6  ;;  %v1718_v4 = vrot.slane %v1555_v23, %v2162_v14 }
 0x2c5   : > { %v1729_v43 = vrot.slane %v1714_v39, %v2145_v3  ;;  %v1737_v7 = vrot.slane %v1722_v17, %v2145_v3 }
 0x2c6   : > { %1494 = vrot.lane.b32.xlu0 %v1487_v44, %s1978_s18  ;;  %v1690_v62 = vmul.f32 %v1684_v63, %v1660_v6  ;;  %v1691_v38 = vmul.f32 %v1688_v10, %v1660_v6  ;;  %v1733_v16 = vrot.slane %v1718_v4, %v2145_v3 }
 0x2c7   : > { %1496 = vrot.lane.b32.xlu1 %v1488_v46, %s1978_s18  ;;  %v1709_v12 = vpop.permute.xlu1 %1708 }
 0x2c8   : > { %v1738_v37 = vmul.f32 %v1729_v43, %v1709_v12  ;;  %v1739_v47 = vmul.f32 %v1733_v16, %v1709_v12  ;;  %v1740_v14 = vmul.f32 %v1737_v7, %v1709_v12 }
 0x2ca   : > { %1514 = vrot.lane.b32.xlu0 %v1508_v57, %s1978_s18 }
 0x2cb   : > { %1516 = vrot.lane.b32.xlu1 %v1509_v51, %s1978_s18  ;;  %v1142_v20 = vpop.permute.xlu1 %1141 }
 0x2cc   : > { %v1147_v36 = vsel %vm1097_vm7, %v1142_v20, %v1144_v48 }
 0x2cd   : > { %v1151_v8 = vadd.f32 %v1147_v36, %v2541_v15 }
 0x2ce   : > { %1518 = vrot.lane.b32.xlu0 %v1510_v55, %s1978_s18 }
 0x2cf   : > { %1536 = vrot.lane.b32.xlu1 %v1530_v54, %s1978_s18  ;;  %v1146_v59 = vpop.permute.xlu1 %1145 }
 0x2d0   : > { %v1148_v41 = vsel %vm1097_vm7, %v1144_v48, %v1146_v59 }
 0x2d2   : > { %1538 = vrot.lane.b32.xlu0 %v1531_v29, %s1978_s18 }
 0x2d3   : > { %1540 = vrot.lane.b32.xlu1 %v1532_v30, %s1978_s18 }
 0x2d6   : > { %1596 = vrot.lane.b32.xlu0 %v1590_v60, %s1979_s19 }
 0x2d7   : > { %1598 = vrot.lane.b32.xlu1 %v1591_v61, %s1979_s19 }
 0x2da   : > { %1600 = vrot.lane.b32.xlu0 %v1592_v24, %s1979_s19  ;;  %v1152_v24 = vadd.f32 %v1148_v41, %v2544_v42 }
 0x2db   : > { %1646 = vrot.lane.b32.xlu1 %v1640_v32, %s1979_s19 }
 0x2de   : > { %1648 = vrot.lane.b32.xlu0 %v1641_v58, %s1979_s19 }
 0x2df   : > { %1650 = vrot.lane.b32.xlu1 %v1642_v2, %s1979_s19 }
 0x2e2   : > { %1695 = vrot.lane.b32.xlu0 %v1689_v35, %s1979_s19 }
 0x2e3   : > { %1697 = vrot.lane.b32.xlu1 %v1690_v62, %s1979_s19 }
 0x2e6   : > { %1699 = vrot.lane.b32.xlu0 %v1691_v38, %s1979_s19 }
 0x2e7   : > { %1744 = vrot.lane.b32.xlu1 %v1738_v37, %s1979_s19 }
 0x2ea   : > { %1746 = vrot.lane.b32.xlu0 %v1739_v47, %s1979_s19 }
 0x2eb   : > { %1748 = vrot.lane.b32.xlu1 %v1740_v14, %s1979_s19 }
 0x30c   : > { %v1193_v34 = vpop.permute.xlu1 %1192  ;;  %v1191_v45 = vpop.permute.xlu0 %1190 }
 0x30d   : > { %v1196_v25 = vsel %vm1097_vm7, %v1191_v45, %v1193_v34 }
 0x30e   : > { %v1200_v13 = vadd.f32 %v1196_v25, %v1151_v8 }
 0x310   : > { %v1195_v40 = vpop.permute.xlu0 %1194 }
 0x311   : > { %v1240_v44 = vpop.permute.xlu1 %1239  ;;  %v1197_v21 = vsel %vm1097_vm7, %v1193_v34, %v1195_v40 }
 0x312   : > { %v1201_v50 = vadd.f32 %v1197_v21, %v1152_v24 }
 0x314   : > { %v1242_v46 = vpop.permute.xlu0 %1241 }
 0x315   : > { %v1244_v3 = vpop.permute.xlu1 %1243  ;;  %v1245_v53 = vsel %vm1097_vm7, %v1240_v44, %v1242_v46 }
 0x316   : > { %v1246_v9 = vsel %vm1097_vm7, %v1242_v46, %v1244_v3  ;;  %v1249_v58 = vadd.f32 %v1245_v53, %v1200_v13 }
 0x317   : > { %v1250_v39 = vadd.f32 %v1246_v9, %v1201_v50 }
 0x318   : > { %v1300_v49 = vpop.permute.xlu0 %1299 }
 0x319   : > { %v1302_v1 = vpop.permute.xlu1 %1301 }
 0x31a   : > { %v1306_v11 = vsel %vm1305_vm10, %v1300_v49, %v1302_v1 }
 0x31b   : > { %v1310_v2 = vadd.f32 %v1306_v11, %v1249_v58 }
 0x31c   : > { %v1304_v57 = vpop.permute.xlu0 %1303 }
 0x31d   : > { %v1350_v18 = vpop.permute.xlu1 %1349  ;;  %v1307_v63 = vsel %vm1305_vm10, %v1302_v1, %v1304_v57 }
 0x31e   : > { %v1311_v10 = vadd.f32 %v1307_v63, %v1250_v39 }
 0x320   : > { %v1352_v51 = vpop.permute.xlu0 %1351 }
 0x321   : > { %v1354_v52 = vpop.permute.xlu1 %1353  ;;  %v1355_v15 = vsel %vm1305_vm10, %v1350_v18, %v1352_v51 }
 0x322   : > { %v1356_v6 = vsel %vm1305_vm10, %v1352_v51, %v1354_v52  ;;  %v1359_v62 = vadd.f32 %v1355_v15, %v1310_v2 }
 0x323   : > { %v1360_v43 = vadd.f32 %v1356_v6, %v1311_v10 }
 0x324   : > { %v1399_v23 = vpop.permute.xlu0 %1398 }
 0x325   : > { %v1401_v54 = vpop.permute.xlu1 %1400 }
 0x326   : > { %v1404_v35 = vsel %vm1305_vm10, %v1399_v23, %v1401_v54 }
 0x327   : > { %v1408_v16 = vadd.f32 %v1404_v35, %v1359_v62 }
 0x328   : > { %v1403_v5 = vpop.permute.xlu0 %1402 }
 0x329   : > { %v1448_v55 = vpop.permute.xlu1 %1447  ;;  %v1405_v17 = vsel %vm1305_vm10, %v1401_v54, %v1403_v5 }
 0x32a   : > { %v1409_v37 = vadd.f32 %v1405_v17, %v1360_v43 }
 0x32c   : > { %v1450_v31 = vpop.permute.xlu0 %1449 }
 0x32d   : > { %v1452_v26 = vpop.permute.xlu1 %1451  ;;  %v1453_v38 = vsel %vm1305_vm10, %v1448_v55, %v1450_v31 }
 0x32e   : > { %v1454_v12 = vsel %vm1305_vm10, %v1450_v31, %v1452_v26  ;;  %v1457_v20 = vadd.f32 %v1453_v38, %v1408_v16 }
 0x32f   : > { %v1458_v59 = vadd.f32 %v1454_v12, %v1409_v37 }
 0x330   : > { %v1470_v22 = vpop.permute.xlu0 %1469 }
 0x331   : > { %v1472_v28 = vpop.permute.xlu1 %1471 }
 0x332   : > { %v1476_v47 = vsel %vm1475_vm11, %v1470_v22, %v1472_v28 }
 0x333   : > { %v1480_v45 = vadd.f32 %v1476_v47, %v1457_v20 }
 0x334   : > { %v1474_v29 = vpop.permute.xlu0 %1473 }
 0x335   : > { %v1493_v56 = vpop.permute.xlu1 %1492  ;;  %v1477_v48 = vsel %vm1475_vm11, %v1472_v28, %v1474_v29 }
 0x336   : > { %v1481_v46 = vadd.f32 %v1477_v48, %v1458_v59 }
 0x338   : > { %v1495_v19 = vpop.permute.xlu0 %1494 }
 0x339   : > { %v1497_v30 = vpop.permute.xlu1 %1496  ;;  %v1498_v34 = vsel %vm1475_vm11, %v1493_v56, %v1495_v19 }
 0x33a   : > { %v1499_v40 = vsel %vm1475_vm11, %v1495_v19, %v1497_v30  ;;  %v1502_v1 = vadd.f32 %v1498_v34, %v1480_v45 }
 0x33b   : > { %v1503_v18 = vadd.f32 %v1499_v40, %v1481_v46 }
 0x33c   : > { %v1515_v33 = vpop.permute.xlu0 %1514 }
 0x33d   : > { %v1517_v27 = vpop.permute.xlu1 %1516 }
 0x33e   : > { %v1520_v3 = vsel %vm1475_vm11, %v1515_v33, %v1517_v27 }
 0x33f   : > { %v1524_v52 = vadd.f32 %v1520_v3, %v1502_v1 }
 0x340   : > { %v1519_v60 = vpop.permute.xlu0 %1518 }
 0x341   : > { %v1537_v61 = vpop.permute.xlu1 %1536  ;;  %v1521_v57 = vsel %vm1475_vm11, %v1517_v27, %v1519_v60 }
 0x342   : > { %v1525_v5 = vadd.f32 %v1521_v57, %v1503_v18 }
 0x344   : > { %v1539_v32 = vpop.permute.xlu0 %1538 }
 0x345   : > { %v1541_v0 = vpop.permute.xlu1 %1540  ;;  %v1542_v51 = vsel %vm1475_vm11, %v1537_v61, %v1539_v32 }
 0x346   : > { %v1543_v23 = vsel %vm1475_vm11, %v1539_v32, %v1541_v0  ;;  %v1546_v26 = vadd.f32 %v1542_v51, %v1524_v52 }
 0x347   : > { %v1547_v28 = vadd.f32 %v1543_v23, %v1525_v5 }
 0x348   : > { %v1597_v42 = vpop.permute.xlu0 %1596 }
 0x349   : > { %v1599_v4 = vpop.permute.xlu1 %1598 }
 0x34a   : > { %v1603_v55 = vsel %vm1602_vm12, %v1597_v42, %v1599_v4 }
 0x34b   : > { %v1607_v56 = vadd.f32 %v1603_v55, %v1546_v26 }
 0x34c   : > { %v1601_v7 = vpop.permute.xlu0 %1600 }
 0x34d   : > { %v1647_v14 = vpop.permute.xlu1 %1646  ;;  %v1604_v22 = vsel %vm1602_vm12, %v1599_v4, %v1601_v7 }
 0x34e   : > { %v1608_v33 = vadd.f32 %v1604_v22, %v1547_v28 }
 0x350   : > { %v1649_v44 = vpop.permute.xlu0 %1648 }
 0x351   : > { %v1651_v49 = vpop.permute.xlu1 %1650  ;;  %v1652_v29 = vsel %vm1602_vm12, %v1647_v14, %v1649_v44 }
 0x352   : > { %v1653_v19 = vsel %vm1602_vm12, %v1649_v44, %v1651_v49  ;;  %v1656_v41 = vadd.f32 %v1652_v29, %v1607_v56 }
 0x353   : > { %v1657_v25 = vadd.f32 %v1653_v19, %v1608_v33 }
 0x354   : > { %v1696_v54 = vpop.permute.xlu0 %1695 }
 0x355   : > { %v1698_v31 = vpop.permute.xlu1 %1697 }
 0x356   : > { %v1701_v27 = vsel %vm1602_vm12, %v1696_v54, %v1698_v31 }
 0x357   : > { %v1705_v61 = vadd.f32 %v1701_v27, %v1656_v41 }
 0x358   : > { %v1700_v30 = vpop.permute.xlu0 %1699 }
 0x359   : > { %v1745_v36 = vpop.permute.xlu1 %1744  ;;  %v1702_v60 = vsel %vm1602_vm12, %v1698_v31, %v1700_v30 }
 0x35a   : > { %v1706_v21 = vadd.f32 %v1702_v60, %v1657_v25 }
 0x35c   : > { %v1747_v8 = vpop.permute.xlu0 %1746 }
 0x35d   : > { %v1750_v24 = vsel %vm1602_vm12, %v1745_v36, %v1747_v8  ;;  %v1749_v53 = vpop.permute.xlu1 %1748 }
 0x35e   : > { %v1754_v13 = vadd.f32 %v1750_v24, %v1705_v61  ;;  %v1751_v9 = vsel %vm1602_vm12, %v1747_v8, %v1749_v53 }
 0x35f   : > { %v1755_v32 = vadd.f32 %v1751_v9, %v1706_v21 }
 0x360   : > { %1756 = vst [vmem:[%s197_s23] sm:$0xff] %v1754_v13 }
 0x361   : > { %1757 = vst [vmem:[%s197_s23 + $0x8] sm:$0xff] %v1755_v32 }
 0x362 PF: > { %s14_s15 = sadd.s32 1, %s1929_s15  }
 0x363   : > { %p11_p4 = scmp.ge.s32.totalorder %s14_s15, 4  }
 0x365   :  { %13 = sbr.rel (!%p11_p4) target bundleno = 1 (0x1), region = 67 }

</bundles_post_ra>
